<compile_context>
chip_gen: v7x
topology: tpu7x:2x2x1
jax: 0.10.0
libtpu: 0.0.40
codegen_flags: <defaults>
</compile_context>

<pallas_src>
import functools

import jax
import jax.numpy as jnp
from jax.experimental import pallas as pl
from jax.experimental.pallas import tpu as pltpu


def _bottleneck_kernel(x_ref, mask_ref, s1_ref, b1_ref, w1_ref,
                       s2_ref, b2_ref, w2_ref,
                       s3_ref, b3_ref, w3_ref,
                       o_ref, pad_ref, *, H, W):
    """One batch element, spatially pre-padded and flattened.

    x_ref   : ((H+2)*(W+2), Cin) f32, zero spatial halo (identity + bn1 input)
    mask_ref: ((H+2)*(W+2), 1)   f32, 1.0 on interior positions, 0.0 on the halo
    w*_ref  : bf16 matmul weights; s*/b* folded BN scale/bias (f32)
    o_ref   : (H*(W+2), Cin) — valid data at columns [0, W) of each padded row
    pad_ref : ((H+2)*(W+2) + 2, Cm) f32 VMEM scratch holding the conv2 input
    """
    Wp = W + 2
    P = (H + 2) * Wp           # padded spatial positions
    HWp = H * Wp               # output rows at padded width
    Cm = w1_ref.shape[1]

    x = x_ref[...]                                              # (P, Cin) f32

    # bn1 + relu1 (f32 elementwise)
    t = jnp.maximum(x * s1_ref[...] + b1_ref[...], 0.0)

    # conv1: 1x1 conv == channel matmul (bf16 operands, f32 accumulation)
    t = jnp.dot(t.astype(jnp.bfloat16), w1_ref[...],
                preferred_element_type=jnp.float32)             # (P, Cm)

    # bn2 + relu2, then zero the halo so conv2 sees proper zero padding
    t = jnp.maximum(t * s2_ref[...] + b2_ref[...], 0.0) * mask_ref[...]

    # Stash the conv2 input in a flattened VMEM scratch; each 3x3 tap below is then a
    # plain contiguous sublane-offset slice (a view, not a relayout). The tiny tail
    # (2 extra rows) is zeroed so the last two taps never read uninitialized VMEM.
    pad_ref[0:P, :] = t
    pad_ref[P:, :] = jnp.zeros((pad_ref.shape[0] - P, Cm), jnp.float32)

    # conv2: 3x3, stride 1, pad 1 -> nine shifted matmuls accumulated at padded width.
    # Row j = y*(W+2)+x of `acc` holds the conv output for pixel (y, x); columns
    # x in {W, W+1} are junk and are dropped by the wrapper.
    acc = jnp.zeros((HWp, Cm), jnp.float32)
    for ky in range(3):
        for kx in range(3):
            off = ky * Wp + kx
            tap = pad_ref[off:off + HWp, :].astype(jnp.bfloat16)
            acc = acc + jnp.dot(tap, w2_ref[ky, kx],
                                preferred_element_type=jnp.float32)

    # bn3 + relu3
    t = jnp.maximum(acc * s3_ref[...] + b3_ref[...], 0.0)

    # conv3: 1x1 conv back to Cin = 4 * Cm channels
    t = jnp.dot(t.astype(jnp.bfloat16), w3_ref[...],
                preferred_element_type=jnp.float32)             # (HWp, Cin)

    # residual add: the identity at pixel (y, x) sits at padded index
    # (y+1)*(W+2) + (x+1) = (W+3) + (y*(W+2) + x)  ->  one contiguous slice.
    ident = x_ref[W + 3:W + 3 + HWp, :]
    o_ref[...] = jnp.maximum(t + ident, 0.0).astype(o_ref.dtype)


def bottleneck_forward(x_nchw, params):
    s1, b1, w1, s2, b2, w2, s3, b3, w3 = params
    N, Cin, H, W = x_nchw.shape
    Cm = w1.shape[1]
    Hp, Wp = H + 2, W + 2
    P = Hp * Wp
    HWp = H * Wp

    # NCHW -> NHWC, zero spatial halo, flatten to (N, (H+2)*(W+2), Cin).
    x = jnp.transpose(x_nchw, (0, 2, 3, 1))
    x = jnp.pad(x, ((0, 0), (1, 1), (1, 1), (0, 0)))
    x = x.reshape(N, P, Cin)

    # Interior mask: 1 on the original HxW pixels, 0 on the halo.
    r = jnp.arange(Hp)[:, None]
    c = jnp.arange(Wp)[None, :]
    mask = (((r >= 1) & (r <= H) & (c >= 1) & (c <= W))
            .astype(jnp.float32).reshape(P, 1))

    # bf16 matmul operands (cast once; f32 accumulation inside the kernel).
    w1b = w1.astype(jnp.bfloat16)
    w2b = w2.astype(jnp.bfloat16)
    w3b = w3.astype(jnp.bfloat16)

    kernel = functools.partial(_bottleneck_kernel, H=H, W=W)
    out = pl.pallas_call(
        kernel,
        out_shape=jax.ShapeDtypeStruct((N, HWp, Cin), jnp.float32),
        grid_spec=pltpu.PrefetchScalarGridSpec(
            num_scalar_prefetch=0,
            grid=(N,),
            in_specs=[
                pl.BlockSpec((None, P, Cin), lambda n: (n, 0, 0)),     # x (padded, flat)
                pl.BlockSpec((P, 1), lambda n: (0, 0)),                # interior mask
                pl.BlockSpec((1, Cin), lambda n: (0, 0)),              # bn1 scale
                pl.BlockSpec((1, Cin), lambda n: (0, 0)),              # bn1 bias
                pl.BlockSpec((Cin, Cm), lambda n: (0, 0)),             # conv1 weight (bf16)
                pl.BlockSpec((1, Cm), lambda n: (0, 0)),               # bn2 scale
                pl.BlockSpec((1, Cm), lambda n: (0, 0)),               # bn2 bias
                pl.BlockSpec((3, 3, Cm, Cm), lambda n: (0, 0, 0, 0)),  # conv2 weight (bf16, HWIO)
                pl.BlockSpec((1, Cm), lambda n: (0, 0)),               # bn3 scale
                pl.BlockSpec((1, Cm), lambda n: (0, 0)),               # bn3 bias
                pl.BlockSpec((Cm, Cin), lambda n: (0, 0)),             # conv3 weight (bf16)
            ],
            out_specs=pl.BlockSpec((None, HWp, Cin), lambda n: (n, 0, 0)),
            scratch_shapes=[pltpu.VMEM((P + 2, Cm), jnp.float32)],
        ),
        compiler_params=pltpu.CompilerParams(
            dimension_semantics=("parallel",)),
    )(x, mask, s1, b1, w1b, s2, b2, w2b, s3, b3, w3b)

    # Drop the 2 junk columns of each padded row, back to NCHW.
    out = out.reshape(N, H, Wp, Cin)[:, :, :W, :]
    return jnp.transpose(out, (0, 3, 1, 2))


def reference(x_nchw, params):
    """Pure-JAX reference using lax convolutions (NHWC / HWIO), f32 HIGHEST precision."""
    s1, b1, w1, s2, b2, w2, s3, b3, w3 = params
    dn = ('NHWC', 'HWIO', 'NHWC')
    hp = jax.lax.Precision.HIGHEST
    x = jnp.transpose(x_nchw, (0, 2, 3, 1))
    t = jnp.maximum(x * s1.reshape(-1) + b1.reshape(-1), 0.0)
    t = jax.lax.conv_general_dilated(t, w1.reshape(1, 1, *w1.shape), (1, 1), 'VALID',
                                     dimension_numbers=dn, precision=hp)
    t = jnp.maximum(t * s2.reshape(-1) + b2.reshape(-1), 0.0)
    t = jax.lax.conv_general_dilated(t, w2, (1, 1), 'SAME',
                                     dimension_numbers=dn, precision=hp)
    t = jnp.maximum(t * s3.reshape(-1) + b3.reshape(-1), 0.0)
    t = jax.lax.conv_general_dilated(t, w3.reshape(1, 1, *w3.shape), (1, 1), 'VALID',
                                     dimension_numbers=dn, precision=hp)
    out = jnp.maximum(t + x, 0.0)
    return jnp.transpose(out, (0, 3, 1, 2))


if __name__ == "__main__":
    N, Cin, H, W = 2, 16, 8, 8
    Cm = Cin // 4        # out_channels; expansion=4 => conv3 restores Cin; stride=1, downsample=None
    eps = 1e-5

    key = jax.random.PRNGKey(0)
    ks = jax.random.split(key, 16)
    x = jax.random.normal(ks[0], (N, Cin, H, W), jnp.float32)

    def bn_params(kg, kb, km, kv, C):
        gamma = 1.0 + 0.1 * jax.random.normal(kg, (C,), jnp.float32)
        beta = 0.1 * jax.random.normal(kb, (C,), jnp.float32)
        mean = 0.1 * jax.random.normal(km, (C,), jnp.float32)
        var = 0.5 + jnp.abs(jax.random.normal(kv, (C,), jnp.float32))
        scale = gamma / jnp.sqrt(var + eps)
        bias = beta - mean * scale
        return scale.reshape(1, C), bias.reshape(1, C)

    s1, b1 = bn_params(ks[1], ks[2], ks[3], ks[4], Cin)
    s2, b2 = bn_params(ks[5], ks[6], ks[7], ks[8], Cm)
    s3, b3 = bn_params(ks[9], ks[10], ks[11], ks[12], Cm)

    w1 = 0.2 * jax.random.normal(ks[13], (Cin, Cm), jnp.float32)       # conv1: 1x1, Cin -> Cm
    w2 = 0.2 * jax.random.normal(ks[14], (3, 3, Cm, Cm), jnp.float32)  # conv2: 3x3, HWIO
    w3 = 0.2 * jax.random.normal(ks[15], (Cm, Cin), jnp.float32)       # conv3: 1x1, Cm -> 4*Cm

    params = (s1, b1, w1, s2, b2, w2, s3, b3, w3)

    out = jax.block_until_ready(bottleneck_forward(x, params))
    ref = reference(x, params)

    assert out.shape == (N, Cin, H, W), out.shape
    # Tolerance loosened vs. the f32 HIGHEST-precision reference because the kernel
    # runs its matmuls with bf16 operands (f32 accumulation).
    if not jnp.allclose(out, ref, rtol=5e-2, atol=5e-2):
        raise AssertionError(
            f"mismatch: max abs err = {jnp.max(jnp.abs(out - ref))}")
    print("KERNEL_OK")
</pallas_src>

<mosaic_0001>
module attributes {stable_mosaic.version = 11 : i64} {
  func.func @_bottleneck_kernel(%arg0: i32, %arg1: memref<1x100x16xf32, #tpu.memory_space<vmem>>, %arg2: memref<100x1xf32, #tpu.memory_space<vmem>>, %arg3: memref<1x16xf32, #tpu.memory_space<vmem>>, %arg4: memref<1x16xf32, #tpu.memory_space<vmem>>, %arg5: memref<16x4xbf16, #tpu.memory_space<vmem>>, %arg6: memref<1x4xf32, #tpu.memory_space<vmem>>, %arg7: memref<1x4xf32, #tpu.memory_space<vmem>>, %arg8: memref<3x3x4x4xbf16, #tpu.memory_space<vmem>>, %arg9: memref<1x4xf32, #tpu.memory_space<vmem>>, %arg10: memref<1x4xf32, #tpu.memory_space<vmem>>, %arg11: memref<4x16xbf16, #tpu.memory_space<vmem>>, %arg12: memref<1x80x16xf32, #tpu.memory_space<vmem>>, %arg13: memref<102x4xf32, #tpu.memory_space<vmem>>) attributes {dimension_semantics = [#tpu.dimension_semantics<parallel>], iteration_bounds = array<i64: 2>, scalar_prefetch = 0 : i64, scratch_operands = 1 : i64, tpu.core_type = #tpu.core_type<tc>, window_params = [{transform_indices = @transform_0, window_bounds = array<i64: 1, 100, 16>}, {pipeline_mode = #tpu.pipeline_mode<synchronous>, transform_indices = @transform_1, window_bounds = array<i64: 100, 1>}, {pipeline_mode = #tpu.pipeline_mode<synchronous>, transform_indices = @transform_2, window_bounds = array<i64: 1, 16>}, {pipeline_mode = #tpu.pipeline_mode<synchronous>, transform_indices = @transform_3, window_bounds = array<i64: 1, 16>}, {pipeline_mode = #tpu.pipeline_mode<synchronous>, transform_indices = @transform_4, window_bounds = array<i64: 16, 4>}, {pipeline_mode = #tpu.pipeline_mode<synchronous>, transform_indices = @transform_5, window_bounds = array<i64: 1, 4>}, {pipeline_mode = #tpu.pipeline_mode<synchronous>, transform_indices = @transform_6, window_bounds = array<i64: 1, 4>}, {pipeline_mode = #tpu.pipeline_mode<synchronous>, transform_indices = @transform_7, window_bounds = array<i64: 3, 3, 4, 4>}, {pipeline_mode = #tpu.pipeline_mode<synchronous>, transform_indices = @transform_8, window_bounds = array<i64: 1, 4>}, {pipeline_mode = #tpu.pipeline_mode<synchronous>, transform_indices = @transform_9, window_bounds = array<i64: 1, 4>}, {pipeline_mode = #tpu.pipeline_mode<synchronous>, transform_indices = @transform_10, window_bounds = array<i64: 4, 16>}, {transform_indices = @transform_11, window_bounds = array<i64: 1, 80, 16>}]} {
    %c0 = arith.constant 0 : index
    %c0_0 = arith.constant 0 : index
    %c0_1 = arith.constant 0 : index
    %0 = vector.load %arg1[%c0, %c0_0, %c0_1] : memref<1x100x16xf32, #tpu.memory_space<vmem>>, vector<1x100x16xf32>
    %1 = vector.shape_cast %0 : vector<1x100x16xf32> to vector<100x16xf32>
    %c0_2 = arith.constant 0 : index
    %c0_3 = arith.constant 0 : index
    %2 = vector.load %arg3[%c0_2, %c0_3] : memref<1x16xf32, #tpu.memory_space<vmem>>, vector<1x16xf32>
    %3 = vector.broadcast %2 : vector<1x16xf32> to vector<100x16xf32>
    %4 = arith.mulf %1, %3 : vector<100x16xf32>
    %c0_4 = arith.constant 0 : index
    %c0_5 = arith.constant 0 : index
    %5 = vector.load %arg4[%c0_4, %c0_5] : memref<1x16xf32, #tpu.memory_space<vmem>>, vector<1x16xf32>
    %6 = vector.broadcast %5 : vector<1x16xf32> to vector<100x16xf32>
    %7 = arith.addf %4, %6 : vector<100x16xf32>
    %cst = arith.constant 0.000000e+00 : f32
    %8 = vector.broadcast %cst : f32 to vector<100x16xf32>
    %9 = arith.maximumf %7, %8 : vector<100x16xf32>
    %10 = arith.truncf %9 : vector<100x16xf32> to vector<100x16xbf16>
    %c0_6 = arith.constant 0 : index
    %c0_7 = arith.constant 0 : index
    %11 = vector.load %arg5[%c0_6, %c0_7] : memref<16x4xbf16, #tpu.memory_space<vmem>>, vector<16x4xbf16>
    %cst_8 = arith.constant dense<0.000000e+00> : vector<100x4xf32>
    %12 = tpu.matmul %10, %11, %cst_8 {dimension_numbers = #tpu.dot_dimension_numbers<[1], [0], [0], [1], [0, 0, 1, 1], [], []>} : vector<100x16xbf16>, vector<16x4xbf16>, vector<100x4xf32> -> vector<100x4xf32>
    %c0_9 = arith.constant 0 : index
    %c0_10 = arith.constant 0 : index
    %13 = vector.load %arg6[%c0_9, %c0_10] : memref<1x4xf32, #tpu.memory_space<vmem>>, vector<1x4xf32>
    %14 = vector.broadcast %13 : vector<1x4xf32> to vector<100x4xf32>
    %15 = arith.mulf %12, %14 : vector<100x4xf32>
    %c0_11 = arith.constant 0 : index
    %c0_12 = arith.constant 0 : index
    %16 = vector.load %arg7[%c0_11, %c0_12] : memref<1x4xf32, #tpu.memory_space<vmem>>, vector<1x4xf32>
    %17 = vector.broadcast %16 : vector<1x4xf32> to vector<100x4xf32>
    %18 = arith.addf %15, %17 : vector<100x4xf32>
    %cst_13 = arith.constant 0.000000e+00 : f32
    %19 = vector.broadcast %cst_13 : f32 to vector<100x4xf32>
    %20 = arith.maximumf %18, %19 : vector<100x4xf32>
    %c0_14 = arith.constant 0 : index
    %c0_15 = arith.constant 0 : index
    %21 = vector.load %arg2[%c0_14, %c0_15] : memref<100x1xf32, #tpu.memory_space<vmem>>, vector<100x1xf32>
    %22 = vector.broadcast %21 : vector<100x1xf32> to vector<100x4xf32>
    %23 = arith.mulf %20, %22 : vector<100x4xf32>
    %c0_16 = arith.constant 0 : index
    %c0_17 = arith.constant 0 : index
    %24 = vector.load %arg13[%c0_16, %c0_17] : memref<102x4xf32, #tpu.memory_space<vmem>>, vector<100x4xf32>
    tpu.vector_store %arg13[%c0_16, %c0_17], %23 {strides = array<i32>} : memref<102x4xf32, #tpu.memory_space<vmem>>, vector<100x4xf32>,
    %cst_18 = arith.constant 0.000000e+00 : f32
    %25 = vector.broadcast %cst_18 : f32 to vector<2x4xf32>
    %c100 = arith.constant 100 : index
    %c0_19 = arith.constant 0 : index
    %26 = vector.load %arg13[%c100, %c0_19] : memref<102x4xf32, #tpu.memory_space<vmem>>, vector<2x4xf32>
    tpu.vector_store %arg13[%c100, %c0_19], %25 {strides = array<i32>} : memref<102x4xf32, #tpu.memory_space<vmem>>, vector<2x4xf32>,
    %cst_20 = arith.constant 0.000000e+00 : f32
    %27 = vector.broadcast %cst_20 : f32 to vector<80x4xf32>
    %c0_21 = arith.constant 0 : index
    %c0_22 = arith.constant 0 : index
    %28 = vector.load %arg13[%c0_21, %c0_22] : memref<102x4xf32, #tpu.memory_space<vmem>>, vector<80x4xf32>
    %29 = arith.truncf %28 : vector<80x4xf32> to vector<80x4xbf16>
    %c0_23 = arith.constant 0 : index
    %c0_24 = arith.constant 0 : index
    %c0_25 = arith.constant 0 : index
    %c0_26 = arith.constant 0 : index
    %30 = vector.load %arg8[%c0_23, %c0_24, %c0_25, %c0_26] : memref<3x3x4x4xbf16, #tpu.memory_space<vmem>>, vector<1x1x4x4xbf16>
    %31 = vector.shape_cast %30 : vector<1x1x4x4xbf16> to vector<4x4xbf16>
    %cst_27 = arith.constant dense<0.000000e+00> : vector<80x4xf32>
    %32 = tpu.matmul %29, %31, %cst_27 {dimension_numbers = #tpu.dot_dimension_numbers<[1], [0], [0], [1], [0, 0, 1, 1], [], []>} : vector<80x4xbf16>, vector<4x4xbf16>, vector<80x4xf32> -> vector<80x4xf32>
    %33 = arith.addf %27, %32 : vector<80x4xf32>
    %c1 = arith.constant 1 : index
    %c0_28 = arith.constant 0 : index
    %34 = vector.load %arg13[%c1, %c0_28] : memref<102x4xf32, #tpu.memory_space<vmem>>, vector<80x4xf32>
    %35 = arith.truncf %34 : vector<80x4xf32> to vector<80x4xbf16>
    %c0_29 = arith.constant 0 : index
    %c1_30 = arith.constant 1 : index
    %c0_31 = arith.constant 0 : index
    %c0_32 = arith.constant 0 : index
    %36 = vector.load %arg8[%c0_29, %c1_30, %c0_31, %c0_32] : memref<3x3x4x4xbf16, #tpu.memory_space<vmem>>, vector<1x1x4x4xbf16>
    %37 = vector.shape_cast %36 : vector<1x1x4x4xbf16> to vector<4x4xbf16>
    %cst_33 = arith.constant dense<0.000000e+00> : vector<80x4xf32>
    %38 = tpu.matmul %35, %37, %cst_33 {dimension_numbers = #tpu.dot_dimension_numbers<[1], [0], [0], [1], [0, 0, 1, 1], [], []>} : vector<80x4xbf16>, vector<4x4xbf16>, vector<80x4xf32> -> vector<80x4xf32>
    %39 = arith.addf %33, %38 : vector<80x4xf32>
    %c2 = arith.constant 2 : index
    %c0_34 = arith.constant 0 : index
    %40 = vector.load %arg13[%c2, %c0_34] : memref<102x4xf32, #tpu.memory_space<vmem>>, vector<80x4xf32>
    %41 = arith.truncf %40 : vector<80x4xf32> to vector<80x4xbf16>
    %c0_35 = arith.constant 0 : index
    %c2_36 = arith.constant 2 : index
    %c0_37 = arith.constant 0 : index
    %c0_38 = arith.constant 0 : index
    %42 = vector.load %arg8[%c0_35, %c2_36, %c0_37, %c0_38] : memref<3x3x4x4xbf16, #tpu.memory_space<vmem>>, vector<1x1x4x4xbf16>
    %43 = vector.shape_cast %42 : vector<1x1x4x4xbf16> to vector<4x4xbf16>
    %cst_39 = arith.constant dense<0.000000e+00> : vector<80x4xf32>
    %44 = tpu.matmul %41, %43, %cst_39 {dimension_numbers = #tpu.dot_dimension_numbers<[1], [0], [0], [1], [0, 0, 1, 1], [], []>} : vector<80x4xbf16>, vector<4x4xbf16>, vector<80x4xf32> -> vector<80x4xf32>
    %45 = arith.addf %39, %44 : vector<80x4xf32>
    %c10 = arith.constant 10 : index
    %c0_40 = arith.constant 0 : index
    %46 = vector.load %arg13[%c10, %c0_40] : memref<102x4xf32, #tpu.memory_space<vmem>>, vector<80x4xf32>
    %47 = arith.truncf %46 : vector<80x4xf32> to vector<80x4xbf16>
    %c1_41 = arith.constant 1 : index
    %c0_42 = arith.constant 0 : index
    %c0_43 = arith.constant 0 : index
    %c0_44 = arith.constant 0 : index
    %48 = vector.load %arg8[%c1_41, %c0_42, %c0_43, %c0_44] : memref<3x3x4x4xbf16, #tpu.memory_space<vmem>>, vector<1x1x4x4xbf16>
    %49 = vector.shape_cast %48 : vector<1x1x4x4xbf16> to vector<4x4xbf16>
    %cst_45 = arith.constant dense<0.000000e+00> : vector<80x4xf32>
    %50 = tpu.matmul %47, %49, %cst_45 {dimension_numbers = #tpu.dot_dimension_numbers<[1], [0], [0], [1], [0, 0, 1, 1], [], []>} : vector<80x4xbf16>, vector<4x4xbf16>, vector<80x4xf32> -> vector<80x4xf32>
    %51 = arith.addf %45, %50 : vector<80x4xf32>
    %c11 = arith.constant 11 : index
    %c0_46 = arith.constant 0 : index
    %52 = vector.load %arg13[%c11, %c0_46] : memref<102x4xf32, #tpu.memory_space<vmem>>, vector<80x4xf32>
    %53 = arith.truncf %52 : vector<80x4xf32> to vector<80x4xbf16>
    %c1_47 = arith.constant 1 : index
    %c1_48 = arith.constant 1 : index
    %c0_49 = arith.constant 0 : index
    %c0_50 = arith.constant 0 : index
    %54 = vector.load %arg8[%c1_47, %c1_48, %c0_49, %c0_50] : memref<3x3x4x4xbf16, #tpu.memory_space<vmem>>, vector<1x1x4x4xbf16>
    %55 = vector.shape_cast %54 : vector<1x1x4x4xbf16> to vector<4x4xbf16>
    %cst_51 = arith.constant dense<0.000000e+00> : vector<80x4xf32>
    %56 = tpu.matmul %53, %55, %cst_51 {dimension_numbers = #tpu.dot_dimension_numbers<[1], [0], [0], [1], [0, 0, 1, 1], [], []>} : vector<80x4xbf16>, vector<4x4xbf16>, vector<80x4xf32> -> vector<80x4xf32>
    %57 = arith.addf %51, %56 : vector<80x4xf32>
    %c12 = arith.constant 12 : index
    %c0_52 = arith.constant 0 : index
    %58 = vector.load %arg13[%c12, %c0_52] : memref<102x4xf32, #tpu.memory_space<vmem>>, vector<80x4xf32>
    %59 = arith.truncf %58 : vector<80x4xf32> to vector<80x4xbf16>
    %c1_53 = arith.constant 1 : index
    %c2_54 = arith.constant 2 : index
    %c0_55 = arith.constant 0 : index
    %c0_56 = arith.constant 0 : index
    %60 = vector.load %arg8[%c1_53, %c2_54, %c0_55, %c0_56] : memref<3x3x4x4xbf16, #tpu.memory_space<vmem>>, vector<1x1x4x4xbf16>
    %61 = vector.shape_cast %60 : vector<1x1x4x4xbf16> to vector<4x4xbf16>
    %cst_57 = arith.constant dense<0.000000e+00> : vector<80x4xf32>
    %62 = tpu.matmul %59, %61, %cst_57 {dimension_numbers = #tpu.dot_dimension_numbers<[1], [0], [0], [1], [0, 0, 1, 1], [], []>} : vector<80x4xbf16>, vector<4x4xbf16>, vector<80x4xf32> -> vector<80x4xf32>
    %63 = arith.addf %57, %62 : vector<80x4xf32>
    %c20 = arith.constant 20 : index
    %c0_58 = arith.constant 0 : index
    %64 = vector.load %arg13[%c20, %c0_58] : memref<102x4xf32, #tpu.memory_space<vmem>>, vector<80x4xf32>
    %65 = arith.truncf %64 : vector<80x4xf32> to vector<80x4xbf16>
    %c2_59 = arith.constant 2 : index
    %c0_60 = arith.constant 0 : index
    %c0_61 = arith.constant 0 : index
    %c0_62 = arith.constant 0 : index
    %66 = vector.load %arg8[%c2_59, %c0_60, %c0_61, %c0_62] : memref<3x3x4x4xbf16, #tpu.memory_space<vmem>>, vector<1x1x4x4xbf16>
    %67 = vector.shape_cast %66 : vector<1x1x4x4xbf16> to vector<4x4xbf16>
    %cst_63 = arith.constant dense<0.000000e+00> : vector<80x4xf32>
    %68 = tpu.matmul %65, %67, %cst_63 {dimension_numbers = #tpu.dot_dimension_numbers<[1], [0], [0], [1], [0, 0, 1, 1], [], []>} : vector<80x4xbf16>, vector<4x4xbf16>, vector<80x4xf32> -> vector<80x4xf32>
    %69 = arith.addf %63, %68 : vector<80x4xf32>
    %c21 = arith.constant 21 : index
    %c0_64 = arith.constant 0 : index
    %70 = vector.load %arg13[%c21, %c0_64] : memref<102x4xf32, #tpu.memory_space<vmem>>, vector<80x4xf32>
    %71 = arith.truncf %70 : vector<80x4xf32> to vector<80x4xbf16>
    %c2_65 = arith.constant 2 : index
    %c1_66 = arith.constant 1 : index
    %c0_67 = arith.constant 0 : index
    %c0_68 = arith.constant 0 : index
    %72 = vector.load %arg8[%c2_65, %c1_66, %c0_67, %c0_68] : memref<3x3x4x4xbf16, #tpu.memory_space<vmem>>, vector<1x1x4x4xbf16>
    %73 = vector.shape_cast %72 : vector<1x1x4x4xbf16> to vector<4x4xbf16>
    %cst_69 = arith.constant dense<0.000000e+00> : vector<80x4xf32>
    %74 = tpu.matmul %71, %73, %cst_69 {dimension_numbers = #tpu.dot_dimension_numbers<[1], [0], [0], [1], [0, 0, 1, 1], [], []>} : vector<80x4xbf16>, vector<4x4xbf16>, vector<80x4xf32> -> vector<80x4xf32>
    %75 = arith.addf %69, %74 : vector<80x4xf32>
    %c22 = arith.constant 22 : index
    %c0_70 = arith.constant 0 : index
    %76 = vector.load %arg13[%c22, %c0_70] : memref<102x4xf32, #tpu.memory_space<vmem>>, vector<80x4xf32>
    %77 = arith.truncf %76 : vector<80x4xf32> to vector<80x4xbf16>
    %c2_71 = arith.constant 2 : index
    %c2_72 = arith.constant 2 : index
    %c0_73 = arith.constant 0 : index
    %c0_74 = arith.constant 0 : index
    %78 = vector.load %arg8[%c2_71, %c2_72, %c0_73, %c0_74] : memref<3x3x4x4xbf16, #tpu.memory_space<vmem>>, vector<1x1x4x4xbf16>
    %79 = vector.shape_cast %78 : vector<1x1x4x4xbf16> to vector<4x4xbf16>
    %cst_75 = arith.constant dense<0.000000e+00> : vector<80x4xf32>
    %80 = tpu.matmul %77, %79, %cst_75 {dimension_numbers = #tpu.dot_dimension_numbers<[1], [0], [0], [1], [0, 0, 1, 1], [], []>} : vector<80x4xbf16>, vector<4x4xbf16>, vector<80x4xf32> -> vector<80x4xf32>
    %81 = arith.addf %75, %80 : vector<80x4xf32>
    %c0_76 = arith.constant 0 : index
    %c0_77 = arith.constant 0 : index
    %82 = vector.load %arg9[%c0_76, %c0_77] : memref<1x4xf32, #tpu.memory_space<vmem>>, vector<1x4xf32>
    %83 = vector.broadcast %82 : vector<1x4xf32> to vector<80x4xf32>
    %84 = arith.mulf %81, %83 : vector<80x4xf32>
    %c0_78 = arith.constant 0 : index
    %c0_79 = arith.constant 0 : index
    %85 = vector.load %arg10[%c0_78, %c0_79] : memref<1x4xf32, #tpu.memory_space<vmem>>, vector<1x4xf32>
    %86 = vector.broadcast %85 : vector<1x4xf32> to vector<80x4xf32>
    %87 = arith.addf %84, %86 : vector<80x4xf32>
    %cst_80 = arith.constant 0.000000e+00 : f32
    %88 = vector.broadcast %cst_80 : f32 to vector<80x4xf32>
    %89 = arith.maximumf %87, %88 : vector<80x4xf32>
    %90 = arith.truncf %89 : vector<80x4xf32> to vector<80x4xbf16>
    %c0_81 = arith.constant 0 : index
    %c0_82 = arith.constant 0 : index
    %91 = vector.load %arg11[%c0_81, %c0_82] : memref<4x16xbf16, #tpu.memory_space<vmem>>, vector<4x16xbf16>
    %cst_83 = arith.constant dense<0.000000e+00> : vector<80x16xf32>
    %92 = tpu.matmul %90, %91, %cst_83 {dimension_numbers = #tpu.dot_dimension_numbers<[1], [0], [0], [1], [0, 0, 1, 1], [], []>} : vector<80x4xbf16>, vector<4x16xbf16>, vector<80x16xf32> -> vector<80x16xf32>
    %c0_84 = arith.constant 0 : index
    %c11_85 = arith.constant 11 : index
    %c0_86 = arith.constant 0 : index
    %93 = vector.load %arg1[%c0_84, %c11_85, %c0_86] : memref<1x100x16xf32, #tpu.memory_space<vmem>>, vector<1x80x16xf32>
    %94 = vector.shape_cast %93 : vector<1x80x16xf32> to vector<80x16xf32>
    %95 = arith.addf %92, %94 : vector<80x16xf32>
    %cst_87 = arith.constant 0.000000e+00 : f32
    %96 = vector.broadcast %cst_87 : f32 to vector<80x16xf32>
    %97 = arith.maximumf %95, %96 : vector<80x16xf32>
    %c0_88 = arith.constant 0 : index
    %c0_89 = arith.constant 0 : index
    %c0_90 = arith.constant 0 : index
    %98 = vector.load %arg12[%c0_88, %c0_89, %c0_90] : memref<1x80x16xf32, #tpu.memory_space<vmem>>, vector<1x80x16xf32>
    %99 = vector.shape_cast %98 : vector<1x80x16xf32> to vector<80x16xf32>
    %100 = vector.shape_cast %97 : vector<80x16xf32> to vector<1x80x16xf32>
    tpu.vector_store %arg12[%c0_88, %c0_89, %c0_90], %100 {strides = array<i32>} : memref<1x80x16xf32, #tpu.memory_space<vmem>>, vector<1x80x16xf32>,
    return
  }
  func.func @transform_0(%arg0: i32) -> (i32, i32, i32) {
    %c0_i32 = arith.constant 0 : i32
    %c0_i32_0 = arith.constant 0 : i32
    %c0_i32_1 = arith.constant 0 : i32
    return %arg0, %c0_i32, %c0_i32_0 : i32, i32, i32
  }
  func.func @transform_1(%arg0: i32) -> (i32, i32) {
    %c0_i32 = arith.constant 0 : i32
    %c0_i32_0 = arith.constant 0 : i32
    %c0_i32_1 = arith.constant 0 : i32
    return %c0_i32, %c0_i32_0 : i32, i32
  }
  func.func @transform_2(%arg0: i32) -> (i32, i32) {
    %c0_i32 = arith.constant 0 : i32
    %c0_i32_0 = arith.constant 0 : i32
    %c0_i32_1 = arith.constant 0 : i32
    return %c0_i32, %c0_i32_0 : i32, i32
  }
  func.func @transform_3(%arg0: i32) -> (i32, i32) {
    %c0_i32 = arith.constant 0 : i32
    %c0_i32_0 = arith.constant 0 : i32
    %c0_i32_1 = arith.constant 0 : i32
    return %c0_i32, %c0_i32_0 : i32, i32
  }
  func.func @transform_4(%arg0: i32) -> (i32, i32) {
    %c0_i32 = arith.constant 0 : i32
    %c0_i32_0 = arith.constant 0 : i32
    %c0_i32_1 = arith.constant 0 : i32
    return %c0_i32, %c0_i32_0 : i32, i32
  }
  func.func @transform_5(%arg0: i32) -> (i32, i32) {
    %c0_i32 = arith.constant 0 : i32
    %c0_i32_0 = arith.constant 0 : i32
    %c0_i32_1 = arith.constant 0 : i32
    return %c0_i32, %c0_i32_0 : i32, i32
  }
  func.func @transform_6(%arg0: i32) -> (i32, i32) {
    %c0_i32 = arith.constant 0 : i32
    %c0_i32_0 = arith.constant 0 : i32
    %c0_i32_1 = arith.constant 0 : i32
    return %c0_i32, %c0_i32_0 : i32, i32
  }
  func.func @transform_7(%arg0: i32) -> (i32, i32, i32, i32) {
    %c0_i32 = arith.constant 0 : i32
    %c0_i32_0 = arith.constant 0 : i32
    %c0_i32_1 = arith.constant 0 : i32
    %c0_i32_2 = arith.constant 0 : i32
    %c0_i32_3 = arith.constant 0 : i32
    return %c0_i32, %c0_i32_0, %c0_i32_1, %c0_i32_2 : i32, i32, i32, i32
  }
  func.func @transform_8(%arg0: i32) -> (i32, i32) {
    %c0_i32 = arith.constant 0 : i32
    %c0_i32_0 = arith.constant 0 : i32
    %c0_i32_1 = arith.constant 0 : i32
    return %c0_i32, %c0_i32_0 : i32, i32
  }
  func.func @transform_9(%arg0: i32) -> (i32, i32) {
    %c0_i32 = arith.constant 0 : i32
    %c0_i32_0 = arith.constant 0 : i32
    %c0_i32_1 = arith.constant 0 : i32
    return %c0_i32, %c0_i32_0 : i32, i32
  }
  func.func @transform_10(%arg0: i32) -> (i32, i32) {
    %c0_i32 = arith.constant 0 : i32
    %c0_i32_0 = arith.constant 0 : i32
    %c0_i32_1 = arith.constant 0 : i32
    return %c0_i32, %c0_i32_0 : i32, i32
  }
  func.func @transform_11(%arg0: i32) -> (i32, i32, i32) {
    %c0_i32 = arith.constant 0 : i32
    %c0_i32_0 = arith.constant 0 : i32
    %c0_i32_1 = arith.constant 0 : i32
    return %arg0, %c0_i32, %c0_i32_0 : i32, i32, i32
  }
}

</mosaic_0001>

<bundles_post_ra>
// kernel: tpu_custom_call.1
= control target key start
LH: loop header
LB: loop body
LE: loop exit
PB: predicated region body
PF: predicated region fallthrough
CT: control target
= control target key end

     0   :  { %s2646_s17 = smov 0   ;;  %s3159_s0 = inlined_call_operand.vmem [shape: f32[2,100,16], index: 0, kind: input, shape index: {}]   ;;  %s3160_s1 = inlined_call_operand.vmem [shape: f32[100,1], index: 1, kind: input, shape index: {}]   ;;  %s3161_s2 = inlined_call_operand.vmem [shape: f32[1,16], index: 2, kind: input, shape index: {}]   ;;  %s3162_s3 = inlined_call_operand.vmem [shape: f32[1,16], index: 3, kind: input, shape index: {}]   ;;  %s3163_s4 = inlined_call_operand.vmem [shape: bf16[16,4], index: 4, kind: input, shape index: {}]   ;;  %s3164_s5 = inlined_call_operand.vmem [shape: f32[1,4], index: 5, kind: input, shape index: {}]   ;;  %s3165_s6 = inlined_call_operand.vmem [shape: f32[1,4], index: 6, kind: input, shape index: {}]   ;;  %s3166_s7 = inlined_call_operand.vmem [shape: bf16[3,3,4,4], index: 7, kind: input, shape index: {}]   ;;  %s3167_s8 = inlined_call_operand.vmem [shape: f32[1,4], index: 8, kind: input, shape index: {}]   ;;  %s3168_s9 = inlined_call_operand.vmem [shape: f32[1,4], index: 9, kind: input, shape index: {}]   ;;  %s3169_s10 = inlined_call_operand.vmem [shape: bf16[4,16], index: 10, kind: input, shape index: {}]   ;;  %s3170_s11 = inlined_call_operand.vmem [shape: f32[2,80,16], index: 11, kind: output, shape index: {}]  }
   0x1 LB: > { %s2008_s18 = sadd.s32 4294967295, %s2581_s17   ;;  %p2012_p0 = scmp.ge.s32.totalorder %s2581_s17, 1  ;;  %s2581_s17 = sphi %s2646_s17, %s21_s17  }
   0x2   : > { %p337_p1 = scmp.lt.s32.totalorder %s2581_s17, 3 }
   0x4   : > { %p338_p2 = pnand %p2012_p0, %p337_p1 }
   0x5   : > { %v2574_v0 = vld [vmem:[%s3163_s4] sm:$0xff] (!%p338_p2)   ;;  %v2583_v1 = vmov (!%p338_p2), 0.0   ;;  %p377_p3 = scmp.lt.s32.totalorder (!%p338_p2), %s2008_s18, 1  ;;  %vm2584_vm0 = vmmov (!%p338_p2), 0   ;;  %v637_v2 = vld [vmem:[%s3160_s1 + $0x28] sm:$0xff] (!%p338_p2)  ;;  %v2585_v3 = vmov (!%p338_p2), 0  }
   0x6   : > { %341 = sbr.rel (%p338_p2) target bundleno = 941 (0x3ad), region = 64  ;;  %2157 = vmatprep.subr.bf16.mxu0 (!%p338_p2), %v2583_v1  ;;  %2407 = vmatprep.subr.bf16.mxu1 (!%p338_p2), %v2583_v1  ;;  %v635_v4 = vld [vmem:[%s3160_s1 + $0x18] sm:$0xff] (!%p338_p2)  ;;  %v638_v5 = vld [vmem:[%s3160_s1 + $0x30] sm:$0xff] (!%p338_p2)  ;;  %v636_v6 = vld [vmem:[%s3160_s1 + $0x20] sm:$0xff] (!%p338_p2)  ;;  %vm469_vm1 = vcmask (!%p338_p2), 130048   ;;  %vm788_vm2 = vcmask (!%p338_p2), 1041408  }
   0x7   : > { %2158 = vmatpush3.bf16.msra.mxu0 (!%p338_p2), %v2574_v0  ;;  %2159 = vmatprep.mubr.msk.bf16.mxu0 (!%p338_p2), %vm2584_vm0, %v2583_v1  ;;  %v2682_v7 = vld [vmem:[%s3161_s2] ss:$0 sm:$0xff] (!%p338_p2)  ;;  %v639_v18 = vld [vmem:[%s3160_s1 + $0x38] sm:$0xff] (!%p338_p2)  ;;  %v642_v25 = vld [vmem:[%s3160_s1 + $0x50] sm:$0xff] (!%p338_p2)  ;;  %vm738_vm3 = vcmask (!%p338_p2), 25600   ;;  %vm723_vm4 = vcmask (!%p338_p2), 31744  }
   0x8   : > { %2573 = vset.pattern.permute.xlu1 (!%p338_p2), %v2585_v3  ;;  %2572 = vset.pattern.permute.xlu0 (!%p338_p2), %v2585_v3  ;;  %v2692_v8 = vld [vmem:[%s3162_s3] ss:$0 sm:$0xff] (!%p338_p2)  ;;  %v641_v29 = vld [vmem:[%s3160_s1 + $0x48] sm:$0xff] (!%p338_p2)  ;;  %v643_v35 = vld [vmem:[%s3160_s1 + $0x58] sm:$0xff] (!%p338_p2)  ;;  %739 = vst.msk [vmem:[#allocation2 + $0x64] sm:$0x3] (!%p338_p2), %vm738_vm3, %v2583_v1 }
   0x9   : > { %672 = vperm.xlu1 (!%p338_p2), %2573, %v637_v2   ;;  %662 = vperm.xlu0 (!%p338_p2), %2572, %v635_v4   ;;  %v640_v16 = vld [vmem:[%s3160_s1 + $0x40] sm:$0xff] (!%p338_p2)  ;;  %v633_v34 = vld [vmem:[%s3160_s1 + $0x8] sm:$0xff] (!%p338_p2)  ;;  %v634_v42 = vld [vmem:[%s3160_s1 + $0x10] sm:$0xff] (!%p338_p2)  ;;  %vm736_vm5 = vcmask (!%p338_p2), 27648  }
   0xa   : > { %2187 = vmatprep.subr.bf16.mxu0 (!%p338_p2), %v2583_v1  ;;  %2259 = vmatprep.mubr.msk.bf16.mxu1 (!%p338_p2), %vm2584_vm0, %v2583_v1  ;;  %v632_v39 = vld [vmem:[%s3160_s1] sm:$0xff] (!%p338_p2) }
   0xb   : > { %v644_v47 = vld [vmem:[%s3160_s1 + $0x60] sm:$0xf] (!%p338_p2) }
   0xd   : > { %s3172_s18 = smov (!%p377_p3, %s2008_s18), 1  ;;  %677 = vperm.xlu1 %2573, %v638_v5   ;;  %667 = vperm.xlu0 %2572, %v636_v6  }
   0xe   : > { %s2559_s25 = smul.u32 104, %s3172_s18 }
   0xf   : > { %s2560_s16 = smul.u32 80, %s3172_s18 }
  0x10   : > { %s2687_s15 = scalar_lea.vmem %s3159_s0, %s2559_s25 }
  0x11   : > { %v388_v9 = vld [vmem:[%s2687_s15] sm:$0xff]  ;;  %v389_v10 = vld [vmem:[%s2687_s15 + $0x8] sm:$0xff]  ;;  %v390_v11 = vld [vmem:[%s2687_s15 + $0x10] sm:$0xff]  ;;  %687 = vperm.xlu1 %2573, %v640_v16   ;;  %682 = vperm.xlu0 %2572, %v639_v18   ;;  %s3126_s21 = scalar_lea.vmem %s3170_s11, %s2560_s16 }
  0x12   : > { %v408_v12 = vmul.f32 %v2682_v7, %v388_v9  ;;  %v409_v13 = vmul.f32 %v2682_v7, %v389_v10  ;;  %v391_v14 = vld [vmem:[%s2687_s15 + $0x18] sm:$0xff]  ;;  %v410_v15 = vmul.f32 %v2682_v7, %v390_v11  ;;  %v392_v26 = vld [vmem:[%s2687_s15 + $0x20] sm:$0xff]  ;;  %v393_v27 = vld [vmem:[%s2687_s15 + $0x28] sm:$0xff] }
  0x13   : > { %v411_v17 = vmul.f32 %v2682_v7, %v391_v14  ;;  %v412_v32 = vmul.f32 %v2682_v7, %v392_v26  ;;  %v413_v33 = vmul.f32 %v2682_v7, %v393_v27  ;;  %v394_v40 = vld [vmem:[%s2687_s15 + $0x30] sm:$0xff]  ;;  %v395_v41 = vld [vmem:[%s2687_s15 + $0x38] sm:$0xff]  ;;  %v396_v51 = vld [vmem:[%s2687_s15 + $0x40] sm:$0xff] }
  0x14   : > { %v428_v19 = vadd.f32 %v2692_v8, %v408_v12  ;;  %v429_v20 = vadd.f32 %v2692_v8, %v409_v13  ;;  %v430_v23 = vadd.f32 %v2692_v8, %v410_v15  ;;  %v414_v45 = vmul.f32 %v2682_v7, %v394_v40  ;;  %v397_v52 = vld [vmem:[%s2687_s15 + $0x48] sm:$0xff]  ;;  %v398_v60 = vld [vmem:[%s2687_s15 + $0x50] sm:$0xff]  ;;  %v399_v61 = vld [vmem:[%s2687_s15 + $0x58] sm:$0xff] }
  0x15   : > { %v431_v24 = vadd.f32 %v2692_v8, %v411_v17  ;;  %697 = vperm.xlu1 %2573, %v642_v25   ;;  %692 = vperm.xlu0 %2572, %v641_v29   ;;  %v432_v37 = vadd.f32 %v2692_v8, %v412_v32  ;;  %v433_v38 = vadd.f32 %v2692_v8, %v413_v33  ;;  %v400_v6 = vld [vmem:[%s2687_s15 + $0x60] sm:$0xf] }
  0x16   : > { %v441_v21 = vmax.f32 %v428_v19, 0.0  ;;  %v442_v22 = vmax.f32 %v429_v20, 0.0  ;;  %v443_v30 = vmax.f32 %v430_v23, 0.0  ;;  %v415_v46 = vmul.f32 %v2682_v7, %v395_v41  ;;  %v2806_v25 = vld [vmem:[%s3164_s5] ss:$0 sm:$0xff] }
  0x17   : > { %v444_v31 = vmax.f32 %v431_v24, 0.0  ;;  %v445_v43 = vmax.f32 %v432_v37, 0.0  ;;  %v446_v44 = vmax.f32 %v433_v38, 0.0  ;;  %v434_v49 = vadd.f32 %v2692_v8, %v414_v45 }
  0x18   : > { %v454_v28 = vpack.c.bf16 %v442_v22, %v441_v21  ;;  %v435_v50 = vadd.f32 %v2692_v8, %v415_v46  ;;  %v416_v55 = vmul.f32 %v2682_v7, %v396_v51  ;;  %v417_v56 = vmul.f32 %v2682_v7, %v397_v52 }
  0x19   : > { %652 = vperm.xlu1 %2573, %v633_v34   ;;  %v455_v36 = vpack.c.bf16 %v444_v31, %v443_v30  ;;  %702 = vperm.xlu0 %2572, %v643_v35   ;;  %v456_v48 = vpack.c.bf16 %v446_v44, %v445_v43  ;;  %v447_v53 = vmax.f32 %v434_v49, 0.0  ;;  %v418_v0 = vmul.f32 %v2682_v7, %v398_v60 }
  0x1a   : > { %2160 = vmatmul.mubr.msk.bf16.vlgmr.msra.gmra.mrb[0].mxu0 %vm469_vm1, %v454_v28  ;;  %v448_v54 = vmax.f32 %v435_v50, 0.0  ;;  %v436_v58 = vadd.f32 %v2692_v8, %v416_v55  ;;  %v437_v59 = vadd.f32 %v2692_v8, %v417_v56  ;;  %v419_v2 = vmul.f32 %v2682_v7, %v399_v61  ;;  %v2811_v28 = vld [vmem:[%s3165_s6] ss:$0 sm:$0xff] }
  0x1b   : > { %2163 = vmatprep.mubr.msk.bf16.mxu0 %vm2584_vm0, %v2583_v1  ;;  %v438_v4 = vadd.f32 %v2692_v8, %v418_v0  ;;  %v420_v11 = vmul.f32 %v2682_v7, %v400_v6  ;;  %v2027_v7 = vld [vmem:[%s3166_s7 + $0x2] sm:$0x3] }
  0x1c   : > { %v457_v57 = vpack.c.bf16 %v448_v54, %v447_v53  ;;  %v449_v62 = vmax.f32 %v436_v58, 0.0  ;;  %v450_v63 = vmax.f32 %v437_v59, 0.0  ;;  %v439_v5 = vadd.f32 %v2692_v8, %v419_v2  ;;  %v755_v2 = vld [vmem:[%s3166_s7] sm:$0x3] }
  0x1d   : > { %647 = vperm.xlu1 %2573, %v632_v39   ;;  %657 = vperm.xlu0 %2572, %v634_v42   ;;  %v451_v9 = vmax.f32 %v438_v4, 0.0  ;;  %v440_v13 = vadd.f32 %v2692_v8, %v420_v11  ;;  %v790_v16 = vsel %vm788_vm2, %v2027_v7, 0  ;;  %v2044_v8 = vld [vmem:[%s3166_s7 + $0x6] sm:$0x3] }
  0x1e   : > { %v458_v3 = vpack.c.bf16 %v450_v63, %v449_v62  ;;  %v452_v10 = vmax.f32 %v439_v5, 0.0  ;;  %2188 = vmatpush3.bf16.msra.mxu0 %v790_v16  ;;  %v2790_v17 = vsel %vm788_vm2, %v2044_v8, 0 }
  0x1f   : > { %v453_v14 = vmax.f32 %v440_v13, 0.0  ;;  %2209 = vmatprep.subr.bf16.mxu0 %v2583_v1  ;;  %2408 = vmatpush3.bf16.msra.mxu1 %v2790_v17 }
  0x20   : > { %v459_v12 = vpack.c.bf16 %v452_v10, %v451_v9  ;;  %2275 = vmatprep.subr.bf16.mxu1 %v2583_v1 }
  0x21   : > { %707 = vperm.xlu0 %2572, %v644_v47   ;;  %v460_v15 = vpack.c.bf16 %v453_v14, %v453_v14  ;;  %v881_v14 = vsel %vm788_vm2, %v755_v2, 0 }
  0x22   : > { %2164 = vmatmul.mubr.msk.bf16.gmra.mrb[4].mxu0 %vm469_vm1, %v455_v36 }
  0x23   : > { %2167 = vmatprep.mubr.msk.bf16.mxu0 %vm2584_vm0, %v2583_v1 }
  0x2a   : > { %2168 = vmatmul.mubr.msk.bf16.gmra.mrb[8].mxu0 %vm469_vm1, %v456_v48 }
  0x2b   : > { %2171 = vmatprep.mubr.msk.bf16.mxu0 %vm2584_vm0, %v2583_v1 }
  0x32   : > { %2172 = vmatmul.mubr.msk.bf16.gmra.mrb[12].mxu0 %vm469_vm1, %v457_v57 }
  0x33   : > { %2175 = vmatprep.mubr.msk.bf16.mxu0 %vm2584_vm0, %v2583_v1 }
  0x3a   : > { %2176 = vmatmul.mubr.msk.bf16.gmra.mrb[16].mxu0 %vm469_vm1, %v458_v3 }
  0x3b   : > { %2179 = vmatprep.mubr.msk.bf16.mxu0 %vm2584_vm0, %v2583_v1 }
  0x42   : > { %2180 = vmatmul.mubr.msk.bf16.gmra.mrb[20].mxu0 %vm469_vm1, %v459_v12 }
  0x43   : > { %2183 = vmatprep.mubr.msk.bf16.mxu0 %vm2584_vm0, %v2583_v1 }
  0x4a   : > { %2184 = vmatmul.mubr.msk.bf16.gmra.mrb[24].mxu0 %vm469_vm1, %v460_v15 }
  0x4b   : > { %2189 = vmatprep.mubr.msk.bf16.mxu0 %vm2584_vm0, %v2583_v1 }
  0x88   : > { %v673_v18 = vpop.permute.xlu1 %672  ;;  %v663_v20 = vpop.permute.xlu0 %662 }
  0x8c   : > { %v2795_v19 = vpop.permute.xlu1 %677  ;;  %v668_v22 = vpop.permute.xlu0 %667 }
  0x90   : > { %v2797_v21 = vpop.permute.xlu1 %687  ;;  %v2801_v24 = vpop.permute.xlu0 %682 }
  0x94   : > { %v2799_v23 = vpop.permute.xlu1 %697  ;;  %v2813_v29 = vpop.permute.xlu0 %692 }
  0x98   : > { %v653_v26 = vpop.permute.xlu1 %652  ;;  %v2819_v39 = vpop.permute.xlu0 %702 }
  0x9c   : > { %v648_v36 = vpop.permute.xlu1 %647  ;;  %v658_v50 = vpop.permute.xlu0 %657 }
  0xed   : > { %v525_v27 = vpop.f32.mrb[0].mxu0 }
  0xee   : > { %v586_v30 = vmul.f32 %v2806_v25, %v525_v27  ;;  %v2161_v31 = vpop.f32.mrb[1].mxu0 }
  0xef   : > { %v528_v32 = vpop.f32.mrb[2].mxu0 }
  0xf0   : > { %v606_v33 = vadd.f32 %v2811_v28, %v586_v30  ;;  %v587_v34 = vmul.f32 %v2806_v25, %v528_v32  ;;  %v2162_v35 = vpop.f32.mrb[3].mxu0  ;;  %v2050_v32 = vld [vmem:[%s3166_s7 + $0x8] sm:$0x3] }
  0xf2   : > { %v607_v37 = vadd.f32 %v2811_v28, %v587_v34  ;;  %v619_v38 = vmax.f32 %v606_v33, 0.0 }
  0xf4   : > { %v620_v40 = vmax.f32 %v607_v37, 0.0  ;;  %v710_v41 = vmul.f32 %v648_v36, %v619_v38 }
  0xf5   : > { %v533_v42 = vpop.f32.mrb[4].mxu0 }
  0xf6   : > { %v711_v43 = vmul.f32 %v653_v26, %v620_v40  ;;  %724 = vst.msk [vmem:[#allocation2] sm:$0xff] %vm723_vm4, %v710_v41  ;;  %v588_v44 = vmul.f32 %v2806_v25, %v533_v42  ;;  %v2165_v45 = vpop.f32.mrb[5].mxu0 }
  0xf7   : > { %v536_v46 = vpop.f32.mrb[6].mxu0 }
  0xf8   : > { %725 = vst.msk [vmem:[#allocation2 + $0x8] sm:$0xff] %vm723_vm4, %v711_v43  ;;  %v608_v47 = vadd.f32 %v2811_v28, %v588_v44  ;;  %v589_v48 = vmul.f32 %v2806_v25, %v536_v46  ;;  %v2166_v49 = vpop.f32.mrb[7].mxu0  ;;  %v1225_v43 = vsel %vm788_vm2, %v2050_v32, 0 }
  0xfa   : > { %v609_v51 = vadd.f32 %v2811_v28, %v589_v48  ;;  %v621_v52 = vmax.f32 %v608_v47, 0.0 }
  0xfc   : > { %v622_v53 = vmax.f32 %v609_v51, 0.0  ;;  %v712_v54 = vmul.f32 %v658_v50, %v621_v52 }
  0xfd   : > { %v541_v55 = vpop.f32.mrb[8].mxu0  ;;  %v740_v32 = vld [vmem:[#allocation2] sm:$0xff] }
  0xfe   : > { %v713_v56 = vmul.f32 %v663_v20, %v622_v53  ;;  %726 = vst.msk [vmem:[#allocation2 + $0x10] sm:$0xff] %vm723_vm4, %v712_v54  ;;  %v590_v57 = vmul.f32 %v2806_v25, %v541_v55  ;;  %v2169_v58 = vpop.f32.mrb[9].mxu0 }
  0xff   : > { %v544_v59 = vpop.f32.mrb[10].mxu0  ;;  %v756_v6 = vld [vmem:[#allocation2 + $0x1] sm:$0xff] }
 0x100   : > { %727 = vst.msk [vmem:[#allocation2 + $0x18] sm:$0xff] %vm723_vm4, %v713_v56  ;;  %v610_v60 = vadd.f32 %v2811_v28, %v590_v57  ;;  %v591_v61 = vmul.f32 %v2806_v25, %v544_v59  ;;  %v2170_v62 = vpop.f32.mrb[11].mxu0 }
 0x102   : > { %v623_v63 = vmax.f32 %v610_v60, 0.0  ;;  %v611_v0 = vadd.f32 %v2811_v28, %v591_v61 }
 0x104   : > { %v714_v3 = vmul.f32 %v668_v22, %v623_v63  ;;  %v624_v4 = vmax.f32 %v611_v0, 0.0 }
 0x105   : > { %v549_v5 = vpop.f32.mrb[12].mxu0  ;;  %v757_v9 = vld [vmem:[#allocation2 + $0x9] sm:$0xff] }
 0x106   : > { %728 = vst.msk [vmem:[#allocation2 + $0x20] sm:$0xff] %vm723_vm4, %v714_v3  ;;  %v715_v10 = vmul.f32 %v673_v18, %v624_v4  ;;  %v592_v11 = vmul.f32 %v2806_v25, %v549_v5  ;;  %v2173_v12 = vpop.f32.mrb[13].mxu0  ;;  %v766_v13 = vpack.c.bf16 %v757_v9, %v756_v6 }
 0x107   : > { %v552_v15 = vpop.f32.mrb[14].mxu0  ;;  %v758_v30 = vld [vmem:[#allocation2 + $0x11] sm:$0xff] }
 0x108   : > { %729 = vst.msk [vmem:[#allocation2 + $0x28] sm:$0xff] %vm723_vm4, %v715_v10  ;;  %v612_v7 = vadd.f32 %v2811_v28, %v592_v11  ;;  %v593_v16 = vmul.f32 %v2806_v25, %v552_v15  ;;  %v2174_v8 = vpop.f32.mrb[15].mxu0  ;;  %2190 = vmatmul.mubr.msk.bf16.vlgmr.msra.gmra.mrb[28].mxu0 %vm723_vm4, %v766_v13 }
 0x109   : > { %2193 = vmatprep.mubr.msk.bf16.mxu0 %vm2584_vm0, %v2583_v1  ;;  %2210 = vmatpush3.bf16.msra.mxu0 %v881_v14 }
 0x10a   : > { %v625_v18 = vmax.f32 %v612_v7, 0.0  ;;  %v613_v20 = vadd.f32 %v2811_v28, %v593_v16  ;;  %2231 = vmatprep.subr.bf16.mxu0 %v2583_v1  ;;  %v708_v7 = vpop.permute.xlu0 %707 }
 0x10c   : > { %v716_v22 = vmul.f32 %v2795_v19, %v625_v18  ;;  %v626_v26 = vmax.f32 %v613_v20, 0.0 }
 0x10d   : > { %v557_v27 = vpop.f32.mrb[16].mxu0  ;;  %v759_v31 = vld [vmem:[#allocation2 + $0x19] sm:$0xff] }
 0x10e   : > { %730 = vst.msk [vmem:[#allocation2 + $0x30] sm:$0xff] %vm723_vm4, %v716_v22  ;;  %v717_v33 = vmul.f32 %v2801_v24, %v626_v26  ;;  %v594_v34 = vmul.f32 %v2806_v25, %v557_v27  ;;  %v2177_v35 = vpop.f32.mrb[17].mxu0  ;;  %v767_v36 = vpack.c.bf16 %v759_v31, %v758_v30  ;;  %v2854_v38 = vld [vmem:[#allocation2 + $0x1a] sm:$0xff]  ;;  %v741_v30 = vld [vmem:[#allocation2 + $0x8] sm:$0xff]  ;;  %v2038_v31 = vld [vmem:[%s3166_s7 + $0x4] sm:$0x3] }
 0x10f   : > { %v560_v37 = vpop.f32.mrb[18].mxu0  ;;  %v2856_v19 = vld [vmem:[#allocation2 + $0x22] sm:$0xff]  ;;  %v750_v35 = vpack.c.bf16 %v741_v30, %v740_v32 }
 0x110   : > { %731 = vst.msk [vmem:[#allocation2 + $0x38] sm:$0xff] %vm723_vm4, %v717_v33  ;;  %v614_v40 = vadd.f32 %v2811_v28, %v594_v34  ;;  %v595_v41 = vmul.f32 %v2806_v25, %v560_v37  ;;  %v2178_v42 = vpop.f32.mrb[19].mxu0  ;;  %2194 = vmatmul.mubr.msk.bf16.gmra.mrb[32].mxu0 %vm723_vm4, %v767_v36  ;;  %v1085_v24 = vpack.c.bf16 %v2856_v19, %v2854_v38  ;;  %v760_v49 = vld [vmem:[#allocation2 + $0x21] sm:$0xff]  ;;  %v1193_v33 = vld [vmem:[#allocation2 + $0x13] sm:$0xff]  ;;  %v2056_v34 = vld [vmem:[%s3166_s7 + $0xa] sm:$0x3] }
 0x111   : > { %2197 = vmatprep.mubr.msk.bf16.mxu0 %vm2584_vm0, %v2583_v1  ;;  %v989_v36 = vsel %vm788_vm2, %v2038_v31, 0  ;;  %v1192_v37 = vld [vmem:[#allocation2 + $0xb] sm:$0xff]  ;;  %v743_v42 = vld [vmem:[#allocation2 + $0x18] sm:$0xff] }
 0x112   : > { %v627_v44 = vmax.f32 %v614_v40, 0.0  ;;  %v615_v45 = vadd.f32 %v2811_v28, %v595_v41  ;;  %2260 = vmatmul.mubr.msk.bf16.vlgmr.msra.gmra.mrb[0].mxu1 %vm723_vm4, %v1085_v24  ;;  %v1202_v40 = vpack.c.bf16 %v1193_v33, %v1192_v37  ;;  %v1343_v41 = vsel %vm788_vm2, %v2056_v34, 0  ;;  %v742_v24 = vld [vmem:[#allocation2 + $0x10] sm:$0xff]  ;;  %v1547_v32 = vld [vmem:[#allocation2 + $0x1d] sm:$0xff] }
 0x113   : > { %2276 = vmatpush3.bf16.msra.mxu1 %v1225_v43  ;;  %2263 = vmatprep.mubr.msk.bf16.mxu1 %vm2584_vm0, %v2583_v1  ;;  %v1195_v43 = vld [vmem:[#allocation2 + $0x23] sm:$0xff]  ;;  %v2074_v33 = vld [vmem:[%s3166_s7 + $0x10] sm:$0x3]  ;;  %v1546_v34 = vld [vmem:[#allocation2 + $0x15] sm:$0xff] }
 0x114   : > { %v718_v46 = vmul.f32 %v2797_v21, %v627_v44  ;;  %v628_v47 = vmax.f32 %v615_v45, 0.0  ;;  %2297 = vmatprep.subr.bf16.mxu1 %v2583_v1  ;;  %v751_v44 = vpack.c.bf16 %v743_v42, %v742_v24  ;;  %v1194_v45 = vld [vmem:[#allocation2 + $0x1b] sm:$0xff] }
 0x115   : > { %v565_v48 = vpop.f32.mrb[20].mxu0  ;;  %v761_v50 = vld [vmem:[#allocation2 + $0x29] sm:$0xff] }
 0x116   : > { %v2873_v51 = vld [vmem:[#allocation2 + $0x2a] sm:$0xff]  ;;  %732 = vst.msk [vmem:[#allocation2 + $0x40] sm:$0xff] %vm723_vm4, %v718_v46  ;;  %v719_v52 = vmul.f32 %v2813_v29, %v628_v47  ;;  %v596_v53 = vmul.f32 %v2806_v25, %v565_v48  ;;  %v2181_v54 = vpop.f32.mrb[21].mxu0  ;;  %v768_v55 = vpack.c.bf16 %v761_v50, %v760_v49  ;;  %v1203_v46 = vpack.c.bf16 %v1195_v43, %v1194_v45  ;;  %v744_v48 = vld [vmem:[#allocation2 + $0x20] sm:$0xff] }
 0x117   : > { %v968_v56 = vpack.c.bf16 %v2873_v51, %v2856_v19  ;;  %v568_v21 = vpop.f32.mrb[22].mxu0  ;;  %v2880_v57 = vld [vmem:[#allocation2 + $0x32] sm:$0xff]  ;;  %v745_v47 = vld [vmem:[#allocation2 + $0x28] sm:$0xff] }
 0x118   : > { %733 = vst.msk [vmem:[#allocation2 + $0x48] sm:$0xff] %vm723_vm4, %v719_v52  ;;  %v616_v58 = vadd.f32 %v2811_v28, %v596_v53  ;;  %v597_v59 = vmul.f32 %v2806_v25, %v568_v21  ;;  %v2182_v60 = vpop.f32.mrb[23].mxu0  ;;  %2198 = vmatmul.mubr.msk.bf16.gmra.mrb[36].mxu0 %vm723_vm4, %v768_v55  ;;  %v1086_v29 = vpack.c.bf16 %v2880_v57, %v2873_v51  ;;  %v762_v3 = vld [vmem:[#allocation2 + $0x31] sm:$0xff] }
 0x119   : > { %2201 = vmatprep.mubr.msk.bf16.mxu0 %vm2584_vm0, %v2583_v1  ;;  %v1197_v49 = vld [vmem:[#allocation2 + $0x33] sm:$0xff]  ;;  %v752_v50 = vpack.c.bf16 %v745_v47, %v744_v48  ;;  %v1196_v52 = vld [vmem:[#allocation2 + $0x2b] sm:$0xff] }
 0x11a   : > { %v629_v61 = vmax.f32 %v616_v58, 0.0  ;;  %v617_v62 = vadd.f32 %v2811_v28, %v597_v59  ;;  %2264 = vmatmul.mubr.msk.bf16.gmra.mrb[4].mxu1 %vm723_vm4, %v1086_v29  ;;  %v1204_v53 = vpack.c.bf16 %v1197_v49, %v1196_v52  ;;  %v747_v54 = vld [vmem:[#allocation2 + $0x38] sm:$0xff]  ;;  %v746_v55 = vld [vmem:[#allocation2 + $0x30] sm:$0xff] }
 0x11b   : > { %2267 = vmatprep.mubr.msk.bf16.mxu1 %vm2584_vm0, %v2583_v1  ;;  %v753_v58 = vpack.c.bf16 %v747_v54, %v746_v55  ;;  %v1549_v37 = vld [vmem:[#allocation2 + $0x2d] sm:$0xff]  ;;  %v1550_v24 = vld [vmem:[#allocation2 + $0x35] sm:$0xff] }
 0x11c   : > { %v720_v63 = vmul.f32 %v2799_v23, %v629_v61  ;;  %v630_v0 = vmax.f32 %v617_v62, 0.0  ;;  %v1664_v52 = vld [vmem:[#allocation2 + $0x16] sm:$0xff]  ;;  %v1667_v54 = vld [vmem:[#allocation2 + $0x2e] sm:$0xff]  ;;  %v1666_v55 = vld [vmem:[#allocation2 + $0x26] sm:$0xff] }
 0x11d   : > { %v573_v2 = vpop.f32.mrb[24].mxu0  ;;  %v763_v4 = vld [vmem:[#allocation2 + $0x39] sm:$0xff] }
 0x11e   : > { %v2895_v5 = vld [vmem:[#allocation2 + $0x3a] sm:$0xff]  ;;  %734 = vst.msk [vmem:[#allocation2 + $0x50] sm:$0xff] %vm723_vm4, %v720_v63  ;;  %v721_v6 = vmul.f32 %v2819_v39, %v630_v0  ;;  %v598_v9 = vmul.f32 %v2806_v25, %v573_v2  ;;  %v769_v10 = vpack.c.bf16 %v763_v4, %v762_v3  ;;  %v2185_v12 = vpop.f32.mrb[25].mxu0  ;;  %v957_v3 = vld [vmem:[#allocation2 + $0xa] sm:$0xff]  ;;  %v956_v4 = vld [vmem:[#allocation2 + $0x2] sm:$0xff] }
 0x11f   : > { %v969_v11 = vpack.c.bf16 %v2895_v5, %v2880_v57  ;;  %v2902_v13 = vld [vmem:[#allocation2 + $0x42] sm:$0xff]  ;;  %v576_v23 = vpop.f32.mrb[26].mxu0  ;;  %v1310_v12 = vld [vmem:[#allocation2 + $0xc] sm:$0xff] }
 0x120   : > { %735 = vst.msk [vmem:[#allocation2 + $0x58] sm:$0xff] %vm723_vm4, %v721_v6  ;;  %v618_v14 = vadd.f32 %v2811_v28, %v598_v9  ;;  %2202 = vmatmul.mubr.msk.bf16.gmra.mrb[40].mxu0 %vm723_vm4, %v769_v10  ;;  %v1087_v15 = vpack.c.bf16 %v2902_v13, %v2895_v5  ;;  %v2186_v39 = vpop.f32.mrb[27].mxu0  ;;  %v764_v8 = vld [vmem:[#allocation2 + $0x41] sm:$0xff]  ;;  %v1311_v6 = vld [vmem:[#allocation2 + $0x14] sm:$0xff]  ;;  %v2062_v9 = vld [vmem:[%s3166_s7 + $0xc] sm:$0x3]  ;;  %v966_v10 = vpack.c.bf16 %v957_v3, %v956_v4 }
 0x121   : > { %2205 = vmatprep.mubr.msk.bf16.mxu0 %vm2584_vm0, %v2583_v1  ;;  %v1199_v21 = vld [vmem:[#allocation2 + $0x43] sm:$0xff]  ;;  %v1198_v59 = vld [vmem:[#allocation2 + $0x3b] sm:$0xff]  ;;  %v1320_v23 = vpack.c.bf16 %v1311_v6, %v1310_v12  ;;  %v2068_v57 = vld [vmem:[%s3166_s7 + $0xe] sm:$0x3] }
 0x122   : > { %v631_v25 = vmax.f32 %v618_v14, 0.0  ;;  %2268 = vmatmul.mubr.msk.bf16.gmra.mrb[8].mxu1 %vm723_vm4, %v1087_v15  ;;  %v1205_v60 = vpack.c.bf16 %v1199_v21, %v1198_v59  ;;  %v749_v29 = vld [vmem:[#allocation2 + $0x48] sm:$0xff]  ;;  %v748_v61 = vld [vmem:[#allocation2 + $0x40] sm:$0xff]  ;;  %v1461_v14 = vsel %vm788_vm2, %v2062_v9, 0  ;;  %v958_v15 = vld [vmem:[#allocation2 + $0x12] sm:$0xff]  ;;  %v1675_v21 = vpack.c.bf16 %v1667_v54, %v1666_v55 }
 0x123   : > { %2271 = vmatprep.mubr.msk.bf16.mxu1 %vm2584_vm0, %v2583_v1  ;;  %v754_v63 = vpack.c.bf16 %v749_v29, %v748_v61  ;;  %v1313_v39 = vld [vmem:[#allocation2 + $0x24] sm:$0xff]  ;;  %v1084_v5 = vpack.c.bf16 %v958_v15, %v957_v3  ;;  %v1668_v59 = vld [vmem:[#allocation2 + $0x36] sm:$0xff]  ;;  %v1831_v3 = vld [vmem:[%s3169_s10] sm:$0x3] }
 0x124   : > { %v722_v16 = vmul.f32 %v708_v7, %v631_v25  ;;  %v967_v25 = vpack.c.bf16 %v2854_v38, %v958_v15  ;;  %v1312_v7 = vld [vmem:[#allocation2 + $0x1c] sm:$0xff]  ;;  %v1552_v45 = vld [vmem:[#allocation2 + $0x45] sm:$0xff]  ;;  %v1858_v4 = vsel %vm788_vm2, %v1831_v3, 0 }
 0x125   : > { %v765_v28 = vld [vmem:[#allocation2 + $0x49] sm:$0xff]  ;;  %v1551_v42 = vld [vmem:[#allocation2 + $0x3d] sm:$0xff] }
 0x126   : > { %v2914_v18 = vld [vmem:[#allocation2 + $0x4a] sm:$0xff]  ;;  %737 = vst.msk [vmem:[#allocation2 + $0x60] sm:$0xf] %vm736_vm5, %v722_v16  ;;  %v770_v20 = vpack.c.bf16 %v765_v28, %v764_v8  ;;  %v1321_v16 = vpack.c.bf16 %v1313_v39, %v1312_v7  ;;  %v1558_v43 = vpack.c.bf16 %v1551_v42, %v1550_v24 }
 0x127   : > { %v970_v22 = vpack.c.bf16 %v2914_v18, %v2902_v13  ;;  %v1083_v26 = vld [vmem:[#allocation2 + $0x52] sm:$0xff]  ;;  %v1317_v28 = vld [vmem:[#allocation2 + $0x44] sm:$0xff]  ;;  %v1579_v13 = vsel %vm788_vm2, %v2068_v57, 0 }
 0x128   : > { %2206 = vmatmul.mubr.msk.bf16.gmra.mrb[44].mxu0 %vm723_vm4, %v770_v20  ;;  %v1088_v27 = vpack.c.bf16 %v1083_v26, %v2914_v18  ;;  %v1201_v62 = vld [vmem:[#allocation2 + $0x53] sm:$0xff]  ;;  %v1200_v0 = vld [vmem:[#allocation2 + $0x4b] sm:$0xff]  ;;  %v1316_v20 = vld [vmem:[#allocation2 + $0x3c] sm:$0xff] }
 0x129   : > { %2211 = vmatprep.mubr.msk.bf16.mxu0 %vm2584_vm0, %v2583_v1  ;;  %v1206_v2 = vpack.c.bf16 %v1201_v62, %v1200_v0  ;;  %v1314_v8 = vld [vmem:[#allocation2 + $0x2c] sm:$0xff]  ;;  %v1323_v26 = vpack.c.bf16 %v1317_v28, %v1316_v20  ;;  %v1319_v19 = vld [vmem:[#allocation2 + $0x54] sm:$0xff] }
 0x12a   : > { %2272 = vmatmul.mubr.msk.bf16.gmra.mrb[12].mxu1 %vm723_vm4, %v1088_v27  ;;  %v1318_v51 = vld [vmem:[#allocation2 + $0x4c] sm:$0xff]  ;;  %v1439_v18 = vpack.c.bf16 %v1314_v8, %v1313_v39  ;;  %v1554_v48 = vld [vmem:[#allocation2 + $0x55] sm:$0xff] }
 0x12b   : > { %2277 = vmatprep.mubr.msk.bf16.mxu1 %vm2584_vm0, %v2583_v1  ;;  %v1441_v27 = vpack.c.bf16 %v1318_v51, %v1317_v28  ;;  %v1671_v29 = vld [vmem:[#allocation2 + $0x4e] sm:$0xff]  ;;  %v1670_v61 = vld [vmem:[#allocation2 + $0x46] sm:$0xff]  ;;  %v1672_v0 = vld [vmem:[#allocation2 + $0x56] sm:$0xff] }
 0x12c   : > { %v1677_v62 = vpack.c.bf16 %v1671_v29, %v1670_v61 }
 0x12d   : > { %v1437_v30 = vld [vmem:[#allocation2 + $0x5c] sm:$0xff] }
 0x12e   : > { %v1442_v31 = vpack.c.bf16 %v1437_v30, %v1319_v19  ;;  %v1555_v47 = vld [vmem:[#allocation2 + $0x5d] sm:$0xff] }
 0x12f   : > { %v1560_v49 = vpack.c.bf16 %v1555_v47, %v1554_v48 }
 0x130   : > { %2212 = vmatmul.mubr.msk.bf16.vlgmr.msra.gmra.mrb[28].mxu0 %vm723_vm4, %v750_v35  ;;  %v1556_v35 = vpack.c.bf16 %v1547_v32, %v1546_v34 }
 0x131   : > { %2215 = vmatprep.mubr.msk.bf16.mxu0 %vm2584_vm0, %v2583_v1  ;;  %2232 = vmatpush3.bf16.msra.mxu0 %v989_v36  ;;  %v1697_v36 = vsel %vm788_vm2, %v2074_v33, 0 }
 0x132   : > { %2278 = vmatmul.mubr.msk.bf16.vlgmr.msra.gmra.mrb[16].mxu1 %vm723_vm4, %v1202_v40  ;;  %2253 = vmatprep.subr.bf16.mxu0 %v2583_v1  ;;  %v1548_v40 = vld [vmem:[#allocation2 + $0x25] sm:$0xff] }
 0x133   : > { %2298 = vmatpush3.bf16.msra.mxu1 %v1343_v41  ;;  %2281 = vmatprep.mubr.msk.bf16.mxu1 %vm2584_vm0, %v2583_v1  ;;  %v1557_v41 = vpack.c.bf16 %v1549_v37, %v1548_v40 }
 0x134   : > { %2319 = vmatprep.subr.bf16.mxu1 %v2583_v1 }
 0x138   : > { %2216 = vmatmul.mubr.msk.bf16.gmra.mrb[32].mxu0 %vm723_vm4, %v751_v44  ;;  %v1553_v44 = vld [vmem:[#allocation2 + $0x4d] sm:$0xff] }
 0x139   : > { %2219 = vmatprep.mubr.msk.bf16.mxu0 %vm2584_vm0, %v2583_v1 }
 0x13a   : > { %2282 = vmatmul.mubr.msk.bf16.gmra.mrb[0].mxu1 %vm723_vm4, %v1203_v46  ;;  %v1559_v46 = vpack.c.bf16 %v1553_v44, %v1552_v45 }
 0x13b   : > { %2285 = vmatprep.mubr.msk.bf16.mxu1 %vm2584_vm0, %v2583_v1 }
 0x140   : > { %2220 = vmatmul.mubr.msk.bf16.gmra.mrb[36].mxu0 %vm723_vm4, %v752_v50  ;;  %v1665_v50 = vld [vmem:[#allocation2 + $0x1e] sm:$0xff] }
 0x141   : > { %2223 = vmatprep.mubr.msk.bf16.mxu0 %vm2584_vm0, %v2583_v1 }
 0x142   : > { %2286 = vmatmul.mubr.msk.bf16.gmra.mrb[4].mxu1 %vm723_vm4, %v1204_v53  ;;  %v1674_v53 = vpack.c.bf16 %v1665_v50, %v1664_v52 }
 0x143   : > { %2289 = vmatprep.mubr.msk.bf16.mxu1 %vm2584_vm0, %v2583_v1 }
 0x148   : > { %2224 = vmatmul.mubr.msk.bf16.gmra.mrb[40].mxu0 %vm723_vm4, %v753_v58  ;;  %v1669_v58 = vld [vmem:[#allocation2 + $0x3e] sm:$0xff] }
 0x149   : > { %2227 = vmatprep.mubr.msk.bf16.mxu0 %vm2584_vm0, %v2583_v1 }
 0x14a   : > { %2290 = vmatmul.mubr.msk.bf16.gmra.mrb[8].mxu1 %vm723_vm4, %v1205_v60  ;;  %v1676_v60 = vpack.c.bf16 %v1669_v58, %v1668_v59 }
 0x14b   : > { %2293 = vmatprep.mubr.msk.bf16.mxu1 %vm2584_vm0, %v2583_v1 }
 0x150   : > { %2228 = vmatmul.mubr.msk.bf16.gmra.mrb[44].mxu0 %vm723_vm4, %v754_v63  ;;  %v1673_v63 = vld [vmem:[#allocation2 + $0x5e] sm:$0xff] }
 0x151   : > { %2233 = vmatprep.mubr.msk.bf16.mxu0 %vm2584_vm0, %v2583_v1 }
 0x152   : > { %2294 = vmatmul.mubr.msk.bf16.gmra.mrb[12].mxu1 %vm723_vm4, %v1206_v2  ;;  %v1678_v2 = vpack.c.bf16 %v1673_v63, %v1672_v0 }
 0x153   : > { %2299 = vmatprep.mubr.msk.bf16.mxu1 %vm2584_vm0, %v2583_v1 }
 0x158   : > { %2234 = vmatmul.mubr.msk.bf16.vlgmr.msra.gmra.mrb[28].mxu0 %vm723_vm4, %v966_v10 }
 0x159   : > { %2237 = vmatprep.mubr.msk.bf16.mxu0 %vm2584_vm0, %v2583_v1  ;;  %2254 = vmatpush3.bf16.msra.mxu0 %v2790_v17  ;;  %v1315_v17 = vld [vmem:[#allocation2 + $0x34] sm:$0xff] }
 0x15a   : > { %2300 = vmatmul.mubr.msk.bf16.vlgmr.msra.gmra.mrb[16].mxu1 %vm723_vm4, %v1320_v23  ;;  %2385 = vmatprep.subr.bf16.mxu0 %v2583_v1  ;;  %v1322_v38 = vpack.c.bf16 %v1315_v17, %v1314_v8 }
 0x15b   : > { %2320 = vmatpush3.bf16.msra.mxu1 %v1461_v14  ;;  %2303 = vmatprep.mubr.msk.bf16.mxu1 %vm2584_vm0, %v2583_v1 }
 0x15c   : > { %2341 = vmatprep.subr.bf16.mxu1 %v2583_v1 }
 0x160   : > { %2238 = vmatmul.mubr.msk.bf16.gmra.mrb[32].mxu0 %vm723_vm4, %v967_v25 }
 0x161   : > { %2241 = vmatprep.mubr.msk.bf16.mxu0 %vm2584_vm0, %v2583_v1 }
 0x162   : > { %2304 = vmatmul.mubr.msk.bf16.gmra.mrb[0].mxu1 %vm723_vm4, %v1321_v16 }
 0x163   : > { %2307 = vmatprep.mubr.msk.bf16.mxu1 %vm2584_vm0, %v2583_v1 }
 0x168   : > { %2242 = vmatmul.mubr.msk.bf16.gmra.mrb[36].mxu0 %vm723_vm4, %v968_v56  ;;  %v1324_v56 = vpack.c.bf16 %v1319_v19, %v1318_v51 }
 0x169   : > { %2245 = vmatprep.mubr.msk.bf16.mxu0 %vm2584_vm0, %v2583_v1 }
 0x16a   : > { %2308 = vmatmul.mubr.msk.bf16.gmra.mrb[4].mxu1 %vm723_vm4, %v1322_v38 }
 0x16b   : > { %2311 = vmatprep.mubr.msk.bf16.mxu1 %vm2584_vm0, %v2583_v1 }
 0x170   : > { %2246 = vmatmul.mubr.msk.bf16.gmra.mrb[40].mxu0 %vm723_vm4, %v969_v11  ;;  %v1438_v11 = vpack.c.bf16 %v1312_v7, %v1311_v6 }
 0x171   : > { %2249 = vmatprep.mubr.msk.bf16.mxu0 %vm2584_vm0, %v2583_v1 }
 0x172   : > { %2312 = vmatmul.mubr.msk.bf16.gmra.mrb[8].mxu1 %vm723_vm4, %v1323_v26 }
 0x173   : > { %2315 = vmatprep.mubr.msk.bf16.mxu1 %vm2584_vm0, %v2583_v1 }
 0x178   : > { %2250 = vmatmul.mubr.msk.bf16.gmra.mrb[44].mxu0 %vm723_vm4, %v970_v22  ;;  %v1440_v22 = vpack.c.bf16 %v1316_v20, %v1315_v17 }
 0x179   : > { %2255 = vmatprep.mubr.msk.bf16.mxu0 %vm2584_vm0, %v2583_v1 }
 0x17a   : > { %2316 = vmatmul.mubr.msk.bf16.gmra.mrb[12].mxu1 %vm723_vm4, %v1324_v56 }
 0x17b   : > { %2321 = vmatprep.mubr.msk.bf16.mxu1 %vm2584_vm0, %v2583_v1 }
 0x180   : > { %2256 = vmatmul.mubr.msk.bf16.vlgmr.msra.gmra.mrb[28].mxu0 %vm723_vm4, %v1084_v5  ;;  %v3078_v5 = vld [vmem:[%s3167_s8] ss:$0 sm:$0xff] }
 0x181   : > { %2387 = vmatprep.mubr.msk.bf16.mxu0 %vm2584_vm0, %v2583_v1  ;;  %2386 = vmatpush3.bf16.msra.mxu0 %v1858_v4 }
 0x182   : > { %2322 = vmatmul.mubr.msk.bf16.vlgmr.msra.gmra.mrb[16].mxu1 %vm723_vm4, %v1438_v11 }
 0x183   : > { %2342 = vmatpush3.bf16.msra.mxu1 %v1579_v13  ;;  %2325 = vmatprep.mubr.msk.bf16.mxu1 %vm2584_vm0, %v2583_v1 }
 0x184   : > { %2363 = vmatprep.subr.bf16.mxu1 %v2583_v1 }
 0x18a   : > { %2326 = vmatmul.mubr.msk.bf16.gmra.mrb[0].mxu1 %vm723_vm4, %v1439_v18  ;;  %v3083_v18 = vld [vmem:[%s3168_s9] ss:$0 sm:$0xff] }
 0x18b   : > { %2329 = vmatprep.mubr.msk.bf16.mxu1 %vm2584_vm0, %v2583_v1 }
 0x192   : > { %2330 = vmatmul.mubr.msk.bf16.gmra.mrb[4].mxu1 %vm723_vm4, %v1440_v22 }
 0x193   : > { %2333 = vmatprep.mubr.msk.bf16.mxu1 %vm2584_vm0, %v2583_v1 }
 0x19a   : > { %2334 = vmatmul.mubr.msk.bf16.gmra.mrb[8].mxu1 %vm723_vm4, %v1441_v27 }
 0x19b   : > { %2337 = vmatprep.mubr.msk.bf16.mxu1 %vm2584_vm0, %v2583_v1 }
 0x1a2   : > { %2338 = vmatmul.mubr.msk.bf16.gmra.mrb[12].mxu1 %vm723_vm4, %v1442_v31 }
 0x1a3   : > { %2343 = vmatprep.mubr.msk.bf16.mxu1 %vm2584_vm0, %v2583_v1 }
 0x1aa   : > { %2344 = vmatmul.mubr.msk.bf16.vlgmr.msra.gmra.mrb[16].mxu1 %vm723_vm4, %v1556_v35 }
 0x1ab   : > { %2364 = vmatpush3.bf16.msra.mxu1 %v1697_v36  ;;  %2347 = vmatprep.mubr.msk.bf16.mxu1 %vm2584_vm0, %v2583_v1 }
 0x1b2   : > { %2348 = vmatmul.mubr.msk.bf16.gmra.mrb[0].mxu1 %vm723_vm4, %v1557_v41 }
 0x1b3   : > { %2351 = vmatprep.mubr.msk.bf16.mxu1 %vm2584_vm0, %v2583_v1 }
 0x1ba   : > { %2352 = vmatmul.mubr.msk.bf16.gmra.mrb[4].mxu1 %vm723_vm4, %v1558_v43 }
 0x1bb   : > { %2355 = vmatprep.mubr.msk.bf16.mxu1 %vm2584_vm0, %v2583_v1 }
 0x1c2   : > { %2356 = vmatmul.mubr.msk.bf16.gmra.mrb[8].mxu1 %vm723_vm4, %v1559_v46 }
 0x1c3   : > { %2359 = vmatprep.mubr.msk.bf16.mxu1 %vm2584_vm0, %v2583_v1 }
 0x1ca   : > { %2360 = vmatmul.mubr.msk.bf16.gmra.mrb[12].mxu1 %vm723_vm4, %v1560_v49 }
 0x1cb   : > { %2365 = vmatprep.mubr.msk.bf16.mxu1 %vm2584_vm0, %v2583_v1 }
 0x1d2   : > { %2366 = vmatmul.mubr.msk.bf16.vlgmr.msra.gmra.mrb[16].mxu1 %vm723_vm4, %v1674_v53 }
 0x1d3   : > { %2369 = vmatprep.mubr.msk.bf16.mxu1 %vm2584_vm0, %v2583_v1 }
 0x1da   : > { %2370 = vmatmul.mubr.msk.bf16.gmra.mrb[0].mxu1 %vm723_vm4, %v1675_v21 }
 0x1db   : > { %2373 = vmatprep.mubr.msk.bf16.mxu1 %vm2584_vm0, %v2583_v1 }
 0x1e2   : > { %2374 = vmatmul.mubr.msk.bf16.gmra.mrb[4].mxu1 %vm723_vm4, %v1676_v60 }
 0x1e3   : > { %2377 = vmatprep.mubr.msk.bf16.mxu1 %vm2584_vm0, %v2583_v1 }
 0x1ea   : > { %2378 = vmatmul.mubr.msk.bf16.gmra.mrb[8].mxu1 %vm723_vm4, %v1677_v62 }
 0x1eb   : > { %2381 = vmatprep.mubr.msk.bf16.mxu1 %vm2584_vm0, %v2583_v1 }
 0x1f2   : > { %2382 = vmatmul.mubr.msk.bf16.gmra.mrb[12].mxu1 %vm723_vm4, %v1678_v2 }
 0x233   : > { %v1033_v6 = vpop.f32.mrb[32].mxu0 }
 0x234   : > { %v2239_v9 = vpop.f32.mrb[33].mxu0 }
 0x235   : > { %v1036_v10 = vpop.f32.mrb[34].mxu0 }
 0x236   : > { %v2240_v12 = vpop.f32.mrb[35].mxu0 }
 0x23b   : > { %v1041_v23 = vpop.f32.mrb[36].mxu0 }
 0x23c   : > { %v2243_v14 = vpop.f32.mrb[37].mxu0 }
 0x23d   : > { %v1044_v15 = vpop.f32.mrb[38].mxu0 }
 0x23e   : > { %v2244_v39 = vpop.f32.mrb[39].mxu0 }
 0x243   : > { %v1049_v25 = vpop.f32.mrb[40].mxu0 }
 0x244   : > { %v2247_v7 = vpop.f32.mrb[41].mxu0 }
 0x245   : > { %v1052_v16 = vpop.f32.mrb[42].mxu0 }
 0x246   : > { %v2248_v17 = vpop.f32.mrb[43].mxu0 }
 0x24b   : > { %v3071_v8 = vpop.f32.mrb[44].mxu0 }
 0x24c   : > { %v2251_v38 = vpop.f32.mrb[45].mxu0 }
 0x24d   : > { %v3073_v28 = vpop.f32.mrb[46].mxu0 }
 0x24e   : > { %v2252_v20 = vpop.f32.mrb[47].mxu0 }
 0x253   : > { %v1143_v26 = vpop.f32.mrb[28].mxu0 }
 0x254   : > { %v2257_v19 = vpop.f32.mrb[29].mxu0 }
 0x255   : > { %v1146_v51 = vpop.f32.mrb[30].mxu0 }
 0x256   : > { %v2258_v56 = vpop.f32.mrb[31].mxu0 }
 0x2a5   : > { %v1733_v57 = vpop.f32.mrb[16].mxu1 }
 0x2a6   : > { %v2409_v11 = vadd.f32 %v1733_v57, %v1143_v26  ;;  %v2367_v13 = vpop.f32.mrb[17].mxu1 }
 0x2a7   : > { %v1736_v22 = vpop.f32.mrb[18].mxu1 }
 0x2a8   : > { %v1789_v27 = vmul.f32 %v2409_v11, %v3078_v5  ;;  %v2410_v30 = vadd.f32 %v1736_v22, %v1146_v51  ;;  %v2368_v31 = vpop.f32.mrb[19].mxu1 }
 0x2a9   : > { %v1833_v31 = vld [vmem:[%s2687_s15 + $0x13] sm:$0xff] }
 0x2aa   : > { %v1806_v32 = vadd.f32 %v3083_v18, %v1789_v27  ;;  %v1790_v33 = vmul.f32 %v2410_v30, %v3078_v5 }
 0x2ac   : > { %v1807_v34 = vadd.f32 %v3083_v18, %v1790_v33  ;;  %v1816_v36 = vmax.f32 %v1806_v32, 0.0 }
 0x2ad   : > { %v1741_v35 = vpop.f32.mrb[0].mxu1 }
 0x2ae   : > { %v1817_v37 = vmax.f32 %v1807_v34, 0.0  ;;  %v2411_v40 = vadd.f32 %v1741_v35, %v1033_v6  ;;  %v2371_v41 = vpop.f32.mrb[1].mxu1 }
 0x2af   : > { %v1744_v42 = vpop.f32.mrb[2].mxu1 }
 0x2b0   : > { %v1826_v24 = vpack.c.bf16 %v1817_v37, %v1816_v36  ;;  %v1791_v43 = vmul.f32 %v2411_v40, %v3078_v5  ;;  %v2412_v44 = vadd.f32 %v1744_v42, %v1036_v10  ;;  %v2372_v45 = vpop.f32.mrb[3].mxu1  ;;  %v1834_v36 = vld [vmem:[%s2687_s15 + $0x1b] sm:$0xff]  ;;  %v1835_v40 = vld [vmem:[%s2687_s15 + $0x23] sm:$0xff] }
 0x2b2   : > { %v1808_v46 = vadd.f32 %v3083_v18, %v1791_v43  ;;  %v1792_v47 = vmul.f32 %v2412_v44, %v3078_v5  ;;  %2388 = vmatmul.mubr.msk.bf16.vlgmr.msra.gmra.mrb[48].mxu0 %vm723_vm4, %v1826_v24 }
 0x2b3   : > { %2391 = vmatprep.mubr.msk.bf16.mxu0 %vm2584_vm0, %v2583_v1 }
 0x2b4   : > { %v1809_v48 = vadd.f32 %v3083_v18, %v1792_v47  ;;  %v1818_v50 = vmax.f32 %v1808_v46, 0.0  ;;  %v1836_v47 = vld [vmem:[%s2687_s15 + $0x2b] sm:$0xff] }
 0x2b5   : > { %v1749_v49 = vpop.f32.mrb[4].mxu1 }
 0x2b6   : > { %v1819_v52 = vmax.f32 %v1809_v48, 0.0  ;;  %v2413_v53 = vadd.f32 %v1749_v49, %v1041_v23  ;;  %v2375_v54 = vpop.f32.mrb[5].mxu1  ;;  %v1837_v49 = vld [vmem:[%s2687_s15 + $0x33] sm:$0xff] }
 0x2b7   : > { %v1752_v55 = vpop.f32.mrb[6].mxu1 }
 0x2b8   : > { %v1827_v21 = vpack.c.bf16 %v1819_v52, %v1818_v50  ;;  %v1793_v58 = vmul.f32 %v2413_v53, %v3078_v5  ;;  %v2414_v59 = vadd.f32 %v1752_v55, %v1044_v15  ;;  %v2376_v60 = vpop.f32.mrb[7].mxu1 }
 0x2ba   : > { %v1810_v29 = vadd.f32 %v3083_v18, %v1793_v58  ;;  %v1794_v61 = vmul.f32 %v2414_v59, %v3078_v5  ;;  %2392 = vmatmul.mubr.msk.bf16.gmra.mrb[52].mxu0 %vm723_vm4, %v1827_v21  ;;  %v1838_v59 = vld [vmem:[%s2687_s15 + $0x3b] sm:$0xff] }
 0x2bb   : > { %2395 = vmatprep.mubr.msk.bf16.mxu0 %vm2584_vm0, %v2583_v1 }
 0x2bc   : > { %v1811_v62 = vadd.f32 %v3083_v18, %v1794_v61  ;;  %v1820_v0 = vmax.f32 %v1810_v29, 0.0  ;;  %v1839_v29 = vld [vmem:[%s2687_s15 + $0x43] sm:$0xff] }
 0x2bd   : > { %v1757_v63 = vpop.f32.mrb[8].mxu1 }
 0x2be   : > { %v1821_v2 = vmax.f32 %v1811_v62, 0.0  ;;  %v2415_v3 = vadd.f32 %v1757_v63, %v1049_v25  ;;  %v2379_v4 = vpop.f32.mrb[9].mxu1 }
 0x2bf   : > { %v1760_v6 = vpop.f32.mrb[10].mxu1 }
 0x2c0   : > { %v1828_v9 = vpack.c.bf16 %v1821_v2, %v1820_v0  ;;  %v1795_v10 = vmul.f32 %v2415_v3, %v3078_v5  ;;  %v2416_v12 = vadd.f32 %v1760_v6, %v1052_v16  ;;  %v2380_v23 = vpop.f32.mrb[11].mxu1  ;;  %v1840_v6 = vld [vmem:[%s2687_s15 + $0x4b] sm:$0xff] }
 0x2c2   : > { %v1812_v14 = vadd.f32 %v3083_v18, %v1795_v10  ;;  %v1796_v15 = vmul.f32 %v2416_v12, %v3078_v5  ;;  %2396 = vmatmul.mubr.msk.bf16.gmra.mrb[56].mxu0 %vm723_vm4, %v1828_v9  ;;  %v1841_v10 = vld [vmem:[%s2687_s15 + $0x53] sm:$0xff] }
 0x2c3   : > { %2399 = vmatprep.mubr.msk.bf16.mxu0 %vm2584_vm0, %v2583_v1 }
 0x2c4   : > { %v1813_v39 = vadd.f32 %v3083_v18, %v1796_v15  ;;  %v1822_v25 = vmax.f32 %v1812_v14, 0.0 }
 0x2c5   : > { %v1765_v7 = vpop.f32.mrb[12].mxu1 }
 0x2c6   : > { %v1823_v17 = vmax.f32 %v1813_v39, 0.0  ;;  %v2417_v38 = vadd.f32 %v1765_v7, %v3071_v8  ;;  %v2383_v20 = vpop.f32.mrb[13].mxu1 }
 0x2c7   : > { %v1768_v16 = vpop.f32.mrb[14].mxu1 }
 0x2c8   : > { %v1829_v26 = vpack.c.bf16 %v1823_v17, %v1822_v25  ;;  %v1797_v19 = vmul.f32 %v2417_v38, %v3078_v5  ;;  %v2418_v51 = vadd.f32 %v1768_v16, %v3073_v28  ;;  %v2384_v56 = vpop.f32.mrb[15].mxu1  ;;  %v1832_v28 = vld [vmem:[%s2687_s15 + $0xb] sm:$0xff] }
 0x2ca   : > { %v1814_v57 = vadd.f32 %v3083_v18, %v1797_v19  ;;  %v1798_v11 = vmul.f32 %v2418_v51, %v3078_v5  ;;  %2400 = vmatmul.mubr.msk.bf16.gmra.mrb[60].mxu0 %vm723_vm4, %v1829_v26 }
 0x2cb   : > { %2403 = vmatprep.mubr.msk.bf16.mxu0 %vm2584_vm0, %v2583_v1 }
 0x2cc   : > { %v1815_v8 = vadd.f32 %v3083_v18, %v1798_v11  ;;  %v1824_v13 = vmax.f32 %v1814_v57, 0.0 }
 0x2ce   : > { %v1825_v22 = vmax.f32 %v1815_v8, 0.0 }
 0x2d0   : > { %v1830_v27 = vpack.c.bf16 %v1825_v22, %v1824_v13 }
 0x2d2   : > { %2404 = vmatmul.mubr.msk.bf16.gmra.mrb[64].mxu0 %vm723_vm4, %v1830_v27 }
 0x385   : > { %v1894_v30 = vpop.f32.mrb[48].mxu0 }
 0x386   : > { %v1895_v32 = vadd.f32 %v1894_v30, %v1832_v28  ;;  %v2389_v5 = vpop.f32.mrb[49].mxu0 }
 0x387   : > { %v1897_v1 = vpop.f32.mrb[50].mxu0 }
 0x388   : > { %v1933_v18 = vmax.f32 %v1895_v32, 0.0  ;;  %v1898_v33 = vadd.f32 %v1897_v1, %v1833_v31  ;;  %v2390_v34 = vpop.f32.mrb[51].mxu0 }
 0x38a   : > { %1943 = vst.msk [vmem:[%s3126_s21] sm:$0xff] %vm469_vm1, %v1933_v18  ;;  %v1934_v35 = vmax.f32 %v1898_v33, 0.0 }
 0x38c   : > { %1944 = vst.msk [vmem:[%s3126_s21 + $0x8] sm:$0xff] %vm469_vm1, %v1934_v35 }
 0x38d   : > { %v1902_v37 = vpop.f32.mrb[52].mxu0 }
 0x38e   : > { %v1903_v41 = vadd.f32 %v1902_v37, %v1834_v36  ;;  %v2393_v42 = vpop.f32.mrb[53].mxu0 }
 0x38f   : > { %v1905_v24 = vpop.f32.mrb[54].mxu0 }
 0x390   : > { %v1935_v43 = vmax.f32 %v1903_v41, 0.0  ;;  %v1906_v44 = vadd.f32 %v1905_v24, %v1835_v40  ;;  %v2394_v45 = vpop.f32.mrb[55].mxu0 }
 0x392   : > { %1945 = vst.msk [vmem:[%s3126_s21 + $0x10] sm:$0xff] %vm469_vm1, %v1935_v43  ;;  %v1936_v46 = vmax.f32 %v1906_v44, 0.0 }
 0x394   : > { %1946 = vst.msk [vmem:[%s3126_s21 + $0x18] sm:$0xff] %vm469_vm1, %v1936_v46 }
 0x395   : > { %v1910_v48 = vpop.f32.mrb[56].mxu0 }
 0x396   : > { %v1911_v50 = vadd.f32 %v1910_v48, %v1836_v47  ;;  %v2397_v52 = vpop.f32.mrb[57].mxu0 }
 0x397   : > { %v1913_v53 = vpop.f32.mrb[58].mxu0 }
 0x398   : > { %v1937_v54 = vmax.f32 %v1911_v50, 0.0  ;;  %v1914_v55 = vadd.f32 %v1913_v53, %v1837_v49  ;;  %v2398_v21 = vpop.f32.mrb[59].mxu0 }
 0x39a   : > { %1947 = vst.msk [vmem:[%s3126_s21 + $0x20] sm:$0xff] %vm469_vm1, %v1937_v54  ;;  %v1938_v58 = vmax.f32 %v1914_v55, 0.0 }
 0x39c   : > { %1948 = vst.msk [vmem:[%s3126_s21 + $0x28] sm:$0xff] %vm469_vm1, %v1938_v58 }
 0x39d   : > { %v1918_v60 = vpop.f32.mrb[60].mxu0 }
 0x39e   : > { %v1919_v61 = vadd.f32 %v1918_v60, %v1838_v59  ;;  %v2401_v62 = vpop.f32.mrb[61].mxu0 }
 0x39f   : > { %v1921_v63 = vpop.f32.mrb[62].mxu0 }
 0x3a0   : > { %v1939_v0 = vmax.f32 %v1919_v61, 0.0  ;;  %v1922_v2 = vadd.f32 %v1921_v63, %v1839_v29  ;;  %v2402_v3 = vpop.f32.mrb[63].mxu0 }
 0x3a2   : > { %1949 = vst.msk [vmem:[%s3126_s21 + $0x30] sm:$0xff] %vm469_vm1, %v1939_v0  ;;  %v1940_v4 = vmax.f32 %v1922_v2, 0.0 }
 0x3a4   : > { %1950 = vst.msk [vmem:[%s3126_s21 + $0x38] sm:$0xff] %vm469_vm1, %v1940_v4 }
 0x3a5   : > { %v1926_v9 = vpop.f32.mrb[64].mxu0 }
 0x3a6   : > { %v1927_v12 = vadd.f32 %v1926_v9, %v1840_v6  ;;  %v2405_v23 = vpop.f32.mrb[65].mxu0 }
 0x3a7   : > { %v1929_v14 = vpop.f32.mrb[66].mxu0 }
 0x3a8   : > { %v1941_v15 = vmax.f32 %v1927_v12, 0.0  ;;  %v1930_v39 = vadd.f32 %v1929_v14, %v1841_v10  ;;  %v2406_v7 = vpop.f32.mrb[67].mxu0 }
 0x3aa   : > { %1951 = vst.msk [vmem:[%s3126_s21 + $0x40] sm:$0xff] %vm469_vm1, %v1941_v15  ;;  %v1942_v25 = vmax.f32 %v1930_v39, 0.0 }
 0x3ac   : > { %1952 = vst.msk [vmem:[%s3126_s21 + $0x48] sm:$0xff] %vm469_vm1, %v1942_v25 }
 0x3ad PF: > { %s21_s17 = sadd.s32 1, %s2581_s17  }
 0x3ae   : > { %p18_p4 = scmp.ge.s32.totalorder %s21_s17, 4  }
 0x3b0   :  { %20 = sbr.rel (!%p18_p4) target bundleno = 1 (0x1), region = 102 }

</bundles_post_ra>
